<compile_context>
chip_gen: v7x
topology: tpu7x:2x2x1
jax: 0.10.0
libtpu: 0.0.40
codegen_flags: <defaults>
</compile_context>

<pallas_src>
import math

import jax
import jax.numpy as jnp
from jax.experimental import pallas as pl
from jax.experimental.pallas import tpu as pltpu

# ---- small, module-consistent shapes ----------------------------------------
B, S, IN_DIM = 2, 8, 1                       # batch, sequence length, input_dim
D_MODEL, NHEAD, DFF, NLAYERS = 32, 4, 64, 3  # 3 encoder layers (module default)
HEAD_DIM = D_MODEL // NHEAD
LN_EPS = 1e-5
MAX_LEN = 5000
BS = B * S
LANES = 128
LROWS = 136                                  # per-layer rows in weight slab (multiple of 8)

assert D_MODEL % NHEAD == 0
assert NHEAD * D_MODEL == LANES and 2 * D_MODEL <= LANES and DFF <= LANES


# ---- in-kernel helpers --------------------------------------------------------
def _nt(a, b):
    """a @ b.T via dot_general (no materialized transpose)."""
    return jax.lax.dot_general(a, b, (((1,), (1,)), ((), ())),
                               preferred_element_type=jnp.float32)


def _layer_norm(x, w, b):
    mu = jnp.mean(x, axis=-1, keepdims=True)
    var = jnp.mean(jnp.square(x - mu), axis=-1, keepdims=True)
    return (x - mu) * jax.lax.rsqrt(var + LN_EPS) * w + b


# ---- kernel -------------------------------------------------------------------
# const slab (BS, 128) layout:
#   [:, 0:32]    ADD   = pe[batch] + enc_b*sqrt(d)           (B*S, D)
#   [:, 32:48]   BIAS  block-diagonal attention bias         (B*S, B*S)
#   [0:B, 48:64] SEL   last-token one-hot selection          (B, B*S)
#   [0, 64:96]   ENCW  enc_w.T * sqrt(d)                     (1, D)
#   [1, 64:96]   DECW  decoder weight row                    (1, D)
#   [0, 96:97]   DECB  decoder bias                          (1, 1)
#
# per-layer block (LROWS, 128) layout (row offsets within the block):
#   [0:32,   0:64]   WQK  = [Wq.T / sqrt(hd) | Wk.T]         (D, 2D)
#   [0:32,  64:128]  W1   = W1.T                             (D, DFF)
#   [32:64,  0:128]  WVO  = per-head Wv_h.T @ Wout_h.T       (D, NHEAD*D)
#   [64:128, 0:32]   W2   = W2.T                             (DFF, D)
#   [128]            [bq/sqrt(hd) | bk | b1]
#   [129]            [bvo = bv@Wout.T + bout | b2 | ln1w | ln1b]
#   [130]            [ln2w | ln2b | pad]
def transformer_kernel(src_ref, const_ref, w_ref, out_ref):
    add = const_ref[:, 0:D_MODEL]
    bias = const_ref[:, 32:48]
    sel = const_ref[0:B, 48:48 + BS]
    encw = const_ref[0:1, 64:96]
    decw = const_ref[1:2, 64:96]
    decb = const_ref[0:1, 96:97]

    # ---- encoder (IN_DIM == 1 -> broadcast multiply) + positional encoding ----
    h = src_ref[...] * encw + add                              # (BS, D)

    for l in range(NLAYERS):
        o = l * LROWS
        wqk = w_ref[o:o + 32, 0:64]
        w1 = w_ref[o:o + 32, 64:128]
        wvo = w_ref[o + 32:o + 64, :]
        w2 = w_ref[o + 64:o + 128, 0:32]
        bqk = w_ref[o + 128:o + 129, 0:64]
        b1 = w_ref[o + 128:o + 129, 64:128]
        bvo = w_ref[o + 129:o + 130, 0:32]
        b2 = w_ref[o + 129:o + 130, 32:64]
        ln1w = w_ref[o + 129:o + 130, 64:96]
        ln1b = w_ref[o + 129:o + 130, 96:128]
        ln2w = w_ref[o + 130:o + 131, 0:32]
        ln2b = w_ref[o + 130:o + 131, 32:64]

        # ---- multi-head self-attention (post-norm), lane-dense 2-D matmuls ----
        qk = jnp.dot(h, wqk, preferred_element_type=jnp.float32) + bqk  # (BS, 2D)
        vo = jnp.dot(h, wvo, preferred_element_type=jnp.float32)        # (BS, H*D)

        acc = None
        for hh in range(NHEAD):
            q = qk[:, hh * HEAD_DIM:(hh + 1) * HEAD_DIM]                       # (BS, hd)
            k = qk[:, D_MODEL + hh * HEAD_DIM:D_MODEL + (hh + 1) * HEAD_DIM]   # (BS, hd)
            s = _nt(q, k) + bias                                               # (BS, BS)
            # row-max kept for numerical safety (inputs unnormalized in layer 0)
            s = s - jnp.max(s, axis=-1, keepdims=True)
            p = jnp.exp(s)
            p = p * pl.reciprocal(jnp.sum(p, axis=-1, keepdims=True), approx=True)
            pv = jnp.dot(p, vo[:, hh * D_MODEL:(hh + 1) * D_MODEL],
                         preferred_element_type=jnp.float32)                   # (BS, D)
            acc = pv if acc is None else acc + pv
        attn = acc + bvo

        h = _layer_norm(h + attn, ln1w, ln1b)

        # ---- feed-forward ----
        f = jnp.maximum(
            jnp.dot(h, w1, preferred_element_type=jnp.float32) + b1, 0.0)      # (BS, DFF)
        f = jnp.dot(f, w2, preferred_element_type=jnp.float32) + b2            # (BS, D)
        h = _layer_norm(h + f, ln2w, ln2b)

    # ---- decoder on the last token of each batch element (selection matmul) ----
    last = jnp.dot(sel, h, preferred_element_type=jnp.float32)                 # (B, D)
    out_ref[...] = jnp.sum(last * decw, axis=-1, keepdims=True) + decb         # (B, 1)


# ---- wrapper ------------------------------------------------------------------
def forward_pallas(src, packed):
    src_flat = src.reshape(BS, IN_DIM)
    vmem = pl.BlockSpec(memory_space=pltpu.MemorySpace.VMEM)
    # Single program, no grid: everything fits in VMEM many times over on
    # v5e/v6e/v7x; all effort goes to layout / critical-path length.
    return pl.pallas_call(
        transformer_kernel,
        out_shape=jax.ShapeDtypeStruct((B, 1), jnp.float32),
        in_specs=[vmem, vmem, vmem],
        out_specs=vmem,
    )(src_flat, packed["const"], packed["layers"])


# ---- host-side parameter repack (transpose / fold constants / pack slabs) -----
def pack_params(params, pe):
    sqrt_d = math.sqrt(D_MODEL)
    scale = 1.0 / math.sqrt(HEAD_DIM)

    # ---- const slab (BS, 128) ----
    const = jnp.zeros((BS, LANES), jnp.float32)
    add = jnp.repeat(pe[:B], S, axis=0) + params["enc_b"] * sqrt_d   # (BS, D)
    const = const.at[:, 0:D_MODEL].set(add)
    batch_of_row = jnp.arange(BS) // S
    bias = jnp.where(batch_of_row[:, None] == batch_of_row[None, :],
                     0.0, -1e30).astype(jnp.float32)                 # (BS, BS)
    const = const.at[:, 32:48].set(bias)
    sel = jnp.zeros((B, BS), jnp.float32)
    sel = sel.at[jnp.arange(B), (jnp.arange(B) + 1) * S - 1].set(1.0)
    const = const.at[0:B, 48:48 + BS].set(sel)
    const = const.at[0:1, 64:96].set(params["enc_w"].T * sqrt_d)
    const = const.at[1:2, 64:96].set(params["dec_w"])
    const = const.at[0:1, 96:97].set(params["dec_b"])

    # ---- per-layer weight slab (NLAYERS*LROWS, 128) ----
    blocks = []
    for l in range(NLAYERS):
        blk = jnp.zeros((LROWS, LANES), jnp.float32)
        w_in, b_in = params["inw"][l], params["inb"][l]
        wq = w_in[0:D_MODEL]
        wk = w_in[D_MODEL:2 * D_MODEL]
        wv = w_in[2 * D_MODEL:3 * D_MODEL]
        bq = b_in[0:D_MODEL]
        bk = b_in[D_MODEL:2 * D_MODEL]
        bv = b_in[2 * D_MODEL:3 * D_MODEL]
        w_out, b_out = params["outw"][l], params["outb"][l]

        blk = blk.at[0:32, 0:32].set(wq.T * scale)
        blk = blk.at[0:32, 32:64].set(wk.T)
        blk = blk.at[0:32, 64:128].set(params["w1"][l].T)
        for hh in range(NHEAD):
            wv_h = wv[hh * HEAD_DIM:(hh + 1) * HEAD_DIM, :]          # (hd, D)
            wout_h = w_out[:, hh * HEAD_DIM:(hh + 1) * HEAD_DIM]     # (D, hd)
            blk = blk.at[32:64, hh * D_MODEL:(hh + 1) * D_MODEL].set(wv_h.T @ wout_h.T)
        blk = blk.at[64:128, 0:32].set(params["w2"][l].T)
        blk = blk.at[128, 0:32].set(bq * scale)
        blk = blk.at[128, 32:64].set(bk)
        blk = blk.at[128, 64:128].set(params["b1"][l])
        blk = blk.at[129, 0:32].set(bv @ w_out.T + b_out)
        blk = blk.at[129, 32:64].set(params["b2"][l])
        blk = blk.at[129, 64:96].set(params["ln1w"][l])
        blk = blk.at[129, 96:128].set(params["ln1b"][l])
        blk = blk.at[130, 0:32].set(params["ln2w"][l])
        blk = blk.at[130, 32:64].set(params["ln2b"][l])
        blocks.append(blk)
    layers = jnp.concatenate(blocks, axis=0)

    return {"const": const, "layers": layers}


# ---- deterministic parameter init (PyTorch-like uniform(-1/sqrt(fan_in), ...)) -
def init_params(key):
    def u(k, shape, fan_in):
        bound = 1.0 / math.sqrt(fan_in)
        return jax.random.uniform(k, shape, jnp.float32, -bound, bound)

    ks = iter(jax.random.split(key, 4 + 8 * NLAYERS))
    p = {}
    p["enc_w"] = u(next(ks), (D_MODEL, IN_DIM), IN_DIM)
    p["enc_b"] = u(next(ks), (1, D_MODEL), IN_DIM)

    inw, inb, outw, outb, w1, b1, w2, b2 = ([] for _ in range(8))
    for _ in range(NLAYERS):
        inw.append(u(next(ks), (3 * D_MODEL, D_MODEL), D_MODEL))
        inb.append(u(next(ks), (3 * D_MODEL,), D_MODEL))
        outw.append(u(next(ks), (D_MODEL, D_MODEL), D_MODEL))
        outb.append(u(next(ks), (D_MODEL,), D_MODEL))
        w1.append(u(next(ks), (DFF, D_MODEL), D_MODEL))
        b1.append(u(next(ks), (DFF,), D_MODEL))
        w2.append(u(next(ks), (D_MODEL, DFF), DFF))
        b2.append(u(next(ks), (D_MODEL,), DFF))
    p["inw"], p["inb"] = jnp.stack(inw), jnp.stack(inb)
    p["outw"], p["outb"] = jnp.stack(outw), jnp.stack(outb)
    p["w1"], p["b1"] = jnp.stack(w1), jnp.stack(b1)
    p["w2"], p["b2"] = jnp.stack(w2), jnp.stack(b2)

    p["ln1w"] = jnp.ones((NLAYERS, D_MODEL), jnp.float32)
    p["ln1b"] = jnp.zeros((NLAYERS, D_MODEL), jnp.float32)
    p["ln2w"] = jnp.ones((NLAYERS, D_MODEL), jnp.float32)
    p["ln2b"] = jnp.zeros((NLAYERS, D_MODEL), jnp.float32)

    p["dec_w"] = u(next(ks), (1, D_MODEL), D_MODEL)
    p["dec_b"] = u(next(ks), (1, 1), D_MODEL)
    return p


def make_pe(max_len, d_model):
    position = jnp.arange(max_len, dtype=jnp.float32)[:, None]
    div_term = jnp.exp(jnp.arange(0, d_model, 2, dtype=jnp.float32)
                       * (-math.log(10000.0) / d_model))
    pe = jnp.zeros((max_len, d_model), jnp.float32)
    pe = pe.at[:, 0::2].set(jnp.sin(position * div_term))
    pe = pe.at[:, 1::2].set(jnp.cos(position * div_term))
    return pe


# ---- pure-JAX reference (original parameterization, for validation) ----------
def _ln_ref(x, w, b):
    mu = jnp.mean(x, axis=-1, keepdims=True)
    var = jnp.mean(jnp.square(x - mu), axis=-1, keepdims=True)
    return (x - mu) * jax.lax.rsqrt(var + LN_EPS) * w + b


def reference_forward(src, params, pe_bd):
    h = src @ params["enc_w"].T + params["enc_b"]
    h = h * math.sqrt(D_MODEL)
    h = h + pe_bd[:, None, :]
    for l in range(NLAYERS):
        qkv = h @ params["inw"][l].T + params["inb"][l]
        q, k, v = jnp.split(qkv, 3, axis=-1)
        q = q.reshape(B, S, NHEAD, HEAD_DIM)
        k = k.reshape(B, S, NHEAD, HEAD_DIM)
        v = v.reshape(B, S, NHEAD, HEAD_DIM)
        s = jnp.einsum("bqhd,bkhd->bhqk", q, k) / math.sqrt(HEAD_DIM)
        p = jax.nn.softmax(s, axis=-1)
        a = jnp.einsum("bhqk,bkhd->bqhd", p, v).reshape(B, S, D_MODEL)
        a = a @ params["outw"][l].T + params["outb"][l]
        h = _ln_ref(h + a, params["ln1w"][l], params["ln1b"][l])
        f = jax.nn.relu(h @ params["w1"][l].T + params["b1"][l])
        f = f @ params["w2"][l].T + params["b2"][l]
        h = _ln_ref(h + f, params["ln2w"][l], params["ln2b"][l])
    return h[:, -1, :] @ params["dec_w"].T + params["dec_b"]


# ---- main --------------------------------------------------------------------
if __name__ == "__main__":
    key = jax.random.PRNGKey(0)
    k_params, k_src = jax.random.split(key)

    params = init_params(k_params)
    src = jax.random.normal(k_src, (B, S, IN_DIM), jnp.float32)
    pe = make_pe(MAX_LEN, D_MODEL)
    pe_bd = pe[:B]                                  # (B, D): rows indexed by batch

    packed = pack_params(params, pe)
    out = forward_pallas(src, packed)
    out = jax.block_until_ready(out)

    ref = reference_forward(src, params, pe_bd)
    assert out.shape == (B, 1), out.shape
    if not jnp.allclose(out, ref, atol=2e-2, rtol=2e-2):
        raise AssertionError(f"Pallas/reference mismatch:\n{out}\nvs\n{ref}")

    print("KERNEL_OK")
</pallas_src>

<mosaic_0001>
module attributes {stable_mosaic.version = 11 : i64} {
  func.func @transformer_kernel(%arg0: memref<16x1xf32, #tpu.memory_space<vmem>>, %arg1: memref<16x128xf32, #tpu.memory_space<vmem>>, %arg2: memref<408x128xf32, #tpu.memory_space<vmem>>, %arg3: memref<2x1xf32, #tpu.memory_space<vmem>>) attributes {dimension_semantics = [], scalar_prefetch = 0 : i64, scratch_operands = 0 : i64, tpu.core_type = #tpu.core_type<tc>} {
    %c0 = arith.constant 0 : index
    %c0_0 = arith.constant 0 : index
    %0 = vector.load %arg1[%c0, %c0_0] : memref<16x128xf32, #tpu.memory_space<vmem>>, vector<16x32xf32>
    %c0_1 = arith.constant 0 : index
    %c32 = arith.constant 32 : index
    %1 = vector.load %arg1[%c0_1, %c32] : memref<16x128xf32, #tpu.memory_space<vmem>>, vector<16x16xf32>
    %c0_2 = arith.constant 0 : index
    %c48 = arith.constant 48 : index
    %2 = vector.load %arg1[%c0_2, %c48] : memref<16x128xf32, #tpu.memory_space<vmem>>, vector<2x16xf32>
    %c0_3 = arith.constant 0 : index
    %c64 = arith.constant 64 : index
    %3 = vector.load %arg1[%c0_3, %c64] : memref<16x128xf32, #tpu.memory_space<vmem>>, vector<1x32xf32>
    %c1 = arith.constant 1 : index
    %c64_4 = arith.constant 64 : index
    %4 = vector.load %arg1[%c1, %c64_4] : memref<16x128xf32, #tpu.memory_space<vmem>>, vector<1x32xf32>
    %c0_5 = arith.constant 0 : index
    %c96 = arith.constant 96 : index
    %5 = vector.load %arg1[%c0_5, %c96] : memref<16x128xf32, #tpu.memory_space<vmem>>, vector<1x1xf32>
    %c0_6 = arith.constant 0 : index
    %c0_7 = arith.constant 0 : index
    %6 = vector.load %arg0[%c0_6, %c0_7] : memref<16x1xf32, #tpu.memory_space<vmem>>, vector<16x1xf32>
    %7 = vector.broadcast %6 : vector<16x1xf32> to vector<16x32xf32>
    %8 = vector.broadcast %3 : vector<1x32xf32> to vector<16x32xf32>
    %9 = arith.mulf %7, %8 : vector<16x32xf32>
    %10 = arith.addf %9, %0 : vector<16x32xf32>
    %c0_8 = arith.constant 0 : index
    %c0_9 = arith.constant 0 : index
    %11 = vector.load %arg2[%c0_8, %c0_9] : memref<408x128xf32, #tpu.memory_space<vmem>>, vector<32x64xf32>
    %c0_10 = arith.constant 0 : index
    %c64_11 = arith.constant 64 : index
    %12 = vector.load %arg2[%c0_10, %c64_11] : memref<408x128xf32, #tpu.memory_space<vmem>>, vector<32x64xf32>
    %c32_12 = arith.constant 32 : index
    %c0_13 = arith.constant 0 : index
    %13 = vector.load %arg2[%c32_12, %c0_13] : memref<408x128xf32, #tpu.memory_space<vmem>>, vector<32x128xf32>
    %c64_14 = arith.constant 64 : index
    %c0_15 = arith.constant 0 : index
    %14 = vector.load %arg2[%c64_14, %c0_15] : memref<408x128xf32, #tpu.memory_space<vmem>>, vector<64x32xf32>
    %c128 = arith.constant 128 : index
    %c0_16 = arith.constant 0 : index
    %15 = vector.load %arg2[%c128, %c0_16] : memref<408x128xf32, #tpu.memory_space<vmem>>, vector<1x64xf32>
    %c128_17 = arith.constant 128 : index
    %c64_18 = arith.constant 64 : index
    %16 = vector.load %arg2[%c128_17, %c64_18] : memref<408x128xf32, #tpu.memory_space<vmem>>, vector<1x64xf32>
    %c129 = arith.constant 129 : index
    %c0_19 = arith.constant 0 : index
    %17 = vector.load %arg2[%c129, %c0_19] : memref<408x128xf32, #tpu.memory_space<vmem>>, vector<1x32xf32>
    %c129_20 = arith.constant 129 : index
    %c32_21 = arith.constant 32 : index
    %18 = vector.load %arg2[%c129_20, %c32_21] : memref<408x128xf32, #tpu.memory_space<vmem>>, vector<1x32xf32>
    %c129_22 = arith.constant 129 : index
    %c64_23 = arith.constant 64 : index
    %19 = vector.load %arg2[%c129_22, %c64_23] : memref<408x128xf32, #tpu.memory_space<vmem>>, vector<1x32xf32>
    %c129_24 = arith.constant 129 : index
    %c96_25 = arith.constant 96 : index
    %20 = vector.load %arg2[%c129_24, %c96_25] : memref<408x128xf32, #tpu.memory_space<vmem>>, vector<1x32xf32>
    %c130 = arith.constant 130 : index
    %c0_26 = arith.constant 0 : index
    %21 = vector.load %arg2[%c130, %c0_26] : memref<408x128xf32, #tpu.memory_space<vmem>>, vector<1x32xf32>
    %c130_27 = arith.constant 130 : index
    %c32_28 = arith.constant 32 : index
    %22 = vector.load %arg2[%c130_27, %c32_28] : memref<408x128xf32, #tpu.memory_space<vmem>>, vector<1x32xf32>
    %cst = arith.constant dense<0.000000e+00> : vector<16x64xf32>
    %23 = tpu.matmul %10, %11, %cst {dimension_numbers = #tpu.dot_dimension_numbers<[1], [0], [0], [1], [0, 0, 1, 1], [], []>} : vector<16x32xf32>, vector<32x64xf32>, vector<16x64xf32> -> vector<16x64xf32>
    %24 = vector.broadcast %15 : vector<1x64xf32> to vector<16x64xf32>
    %25 = arith.addf %23, %24 : vector<16x64xf32>
    %cst_29 = arith.constant dense<0.000000e+00> : vector<16x128xf32>
    %26 = tpu.matmul %10, %13, %cst_29 {dimension_numbers = #tpu.dot_dimension_numbers<[1], [0], [0], [1], [0, 0, 1, 1], [], []>} : vector<16x32xf32>, vector<32x128xf32>, vector<16x128xf32> -> vector<16x128xf32>
    %27 = vector.extract_strided_slice %25 {offsets = [0, 0], sizes = [16, 8], strides = [1, 1]} : vector<16x64xf32> to vector<16x8xf32>
    %28 = vector.extract_strided_slice %25 {offsets = [0, 32], sizes = [16, 8], strides = [1, 1]} : vector<16x64xf32> to vector<16x8xf32>
    %cst_30 = arith.constant dense<0.000000e+00> : vector<16x16xf32>
    %29 = tpu.matmul %27, %28, %cst_30 {dimension_numbers = #tpu.dot_dimension_numbers<[1], [1], [0], [0], [0, 0, 1, 0], [], []>} : vector<16x8xf32>, vector<16x8xf32>, vector<16x16xf32> -> vector<16x16xf32>
    %30 = arith.addf %29, %1 : vector<16x16xf32>
    %cst_31 = arith.constant dense<0xFF800000> : vector<16xf32>
    %31 = vector.multi_reduction <maximumf>, %30, %cst_31 [1] : vector<16x16xf32> to vector<16xf32>
    %32 = vector.shape_cast %31 : vector<16xf32> to vector<16x1xf32>
    %33 = vector.broadcast %32 : vector<16x1xf32> to vector<16x16xf32>
    %34 = arith.subf %30, %33 : vector<16x16xf32>
    %35 = math.exp %34 : vector<16x16xf32>
    %cst_32 = arith.constant dense<0.000000e+00> : vector<16xf32>
    %36 = vector.multi_reduction <add>, %35, %cst_32 [1] : vector<16x16xf32> to vector<16xf32>
    %37 = vector.shape_cast %36 : vector<16xf32> to vector<16x1xf32>
    %38 = tpu.reciprocal %37 {approx = true} : vector<16x1xf32> -> vector<16x1xf32>
    %39 = vector.broadcast %38 : vector<16x1xf32> to vector<16x16xf32>
    %40 = arith.mulf %35, %39 : vector<16x16xf32>
    %41 = vector.extract_strided_slice %26 {offsets = [0, 0], sizes = [16, 32], strides = [1, 1]} : vector<16x128xf32> to vector<16x32xf32>
    %cst_33 = arith.constant dense<0.000000e+00> : vector<16x32xf32>
    %42 = tpu.matmul %40, %41, %cst_33 {dimension_numbers = #tpu.dot_dimension_numbers<[1], [0], [0], [1], [0, 0, 1, 1], [], []>} : vector<16x16xf32>, vector<16x32xf32>, vector<16x32xf32> -> vector<16x32xf32>
    %43 = vector.extract_strided_slice %25 {offsets = [0, 8], sizes = [16, 8], strides = [1, 1]} : vector<16x64xf32> to vector<16x8xf32>
    %44 = vector.extract_strided_slice %25 {offsets = [0, 40], sizes = [16, 8], strides = [1, 1]} : vector<16x64xf32> to vector<16x8xf32>
    %cst_34 = arith.constant dense<0.000000e+00> : vector<16x16xf32>
    %45 = tpu.matmul %43, %44, %cst_34 {dimension_numbers = #tpu.dot_dimension_numbers<[1], [1], [0], [0], [0, 0, 1, 0], [], []>} : vector<16x8xf32>, vector<16x8xf32>, vector<16x16xf32> -> vector<16x16xf32>
    %46 = arith.addf %45, %1 : vector<16x16xf32>
    %cst_35 = arith.constant dense<0xFF800000> : vector<16xf32>
    %47 = vector.multi_reduction <maximumf>, %46, %cst_35 [1] : vector<16x16xf32> to vector<16xf32>
    %48 = vector.shape_cast %47 : vector<16xf32> to vector<16x1xf32>
    %49 = vector.broadcast %48 : vector<16x1xf32> to vector<16x16xf32>
    %50 = arith.subf %46, %49 : vector<16x16xf32>
    %51 = math.exp %50 : vector<16x16xf32>
    %cst_36 = arith.constant dense<0.000000e+00> : vector<16xf32>
    %52 = vector.multi_reduction <add>, %51, %cst_36 [1] : vector<16x16xf32> to vector<16xf32>
    %53 = vector.shape_cast %52 : vector<16xf32> to vector<16x1xf32>
    %54 = tpu.reciprocal %53 {approx = true} : vector<16x1xf32> -> vector<16x1xf32>
    %55 = vector.broadcast %54 : vector<16x1xf32> to vector<16x16xf32>
    %56 = arith.mulf %51, %55 : vector<16x16xf32>
    %57 = vector.extract_strided_slice %26 {offsets = [0, 32], sizes = [16, 32], strides = [1, 1]} : vector<16x128xf32> to vector<16x32xf32>
    %cst_37 = arith.constant dense<0.000000e+00> : vector<16x32xf32>
    %58 = tpu.matmul %56, %57, %cst_37 {dimension_numbers = #tpu.dot_dimension_numbers<[1], [0], [0], [1], [0, 0, 1, 1], [], []>} : vector<16x16xf32>, vector<16x32xf32>, vector<16x32xf32> -> vector<16x32xf32>
    %59 = arith.addf %42, %58 : vector<16x32xf32>
    %60 = vector.extract_strided_slice %25 {offsets = [0, 16], sizes = [16, 8], strides = [1, 1]} : vector<16x64xf32> to vector<16x8xf32>
    %61 = vector.extract_strided_slice %25 {offsets = [0, 48], sizes = [16, 8], strides = [1, 1]} : vector<16x64xf32> to vector<16x8xf32>
    %cst_38 = arith.constant dense<0.000000e+00> : vector<16x16xf32>
    %62 = tpu.matmul %60, %61, %cst_38 {dimension_numbers = #tpu.dot_dimension_numbers<[1], [1], [0], [0], [0, 0, 1, 0], [], []>} : vector<16x8xf32>, vector<16x8xf32>, vector<16x16xf32> -> vector<16x16xf32>
    %63 = arith.addf %62, %1 : vector<16x16xf32>
    %cst_39 = arith.constant dense<0xFF800000> : vector<16xf32>
    %64 = vector.multi_reduction <maximumf>, %63, %cst_39 [1] : vector<16x16xf32> to vector<16xf32>
    %65 = vector.shape_cast %64 : vector<16xf32> to vector<16x1xf32>
    %66 = vector.broadcast %65 : vector<16x1xf32> to vector<16x16xf32>
    %67 = arith.subf %63, %66 : vector<16x16xf32>
    %68 = math.exp %67 : vector<16x16xf32>
    %cst_40 = arith.constant dense<0.000000e+00> : vector<16xf32>
    %69 = vector.multi_reduction <add>, %68, %cst_40 [1] : vector<16x16xf32> to vector<16xf32>
    %70 = vector.shape_cast %69 : vector<16xf32> to vector<16x1xf32>
    %71 = tpu.reciprocal %70 {approx = true} : vector<16x1xf32> -> vector<16x1xf32>
    %72 = vector.broadcast %71 : vector<16x1xf32> to vector<16x16xf32>
    %73 = arith.mulf %68, %72 : vector<16x16xf32>
    %74 = vector.extract_strided_slice %26 {offsets = [0, 64], sizes = [16, 32], strides = [1, 1]} : vector<16x128xf32> to vector<16x32xf32>
    %cst_41 = arith.constant dense<0.000000e+00> : vector<16x32xf32>
    %75 = tpu.matmul %73, %74, %cst_41 {dimension_numbers = #tpu.dot_dimension_numbers<[1], [0], [0], [1], [0, 0, 1, 1], [], []>} : vector<16x16xf32>, vector<16x32xf32>, vector<16x32xf32> -> vector<16x32xf32>
    %76 = arith.addf %59, %75 : vector<16x32xf32>
    %77 = vector.extract_strided_slice %25 {offsets = [0, 24], sizes = [16, 8], strides = [1, 1]} : vector<16x64xf32> to vector<16x8xf32>
    %78 = vector.extract_strided_slice %25 {offsets = [0, 56], sizes = [16, 8], strides = [1, 1]} : vector<16x64xf32> to vector<16x8xf32>
    %cst_42 = arith.constant dense<0.000000e+00> : vector<16x16xf32>
    %79 = tpu.matmul %77, %78, %cst_42 {dimension_numbers = #tpu.dot_dimension_numbers<[1], [1], [0], [0], [0, 0, 1, 0], [], []>} : vector<16x8xf32>, vector<16x8xf32>, vector<16x16xf32> -> vector<16x16xf32>
    %80 = arith.addf %79, %1 : vector<16x16xf32>
    %cst_43 = arith.constant dense<0xFF800000> : vector<16xf32>
    %81 = vector.multi_reduction <maximumf>, %80, %cst_43 [1] : vector<16x16xf32> to vector<16xf32>
    %82 = vector.shape_cast %81 : vector<16xf32> to vector<16x1xf32>
    %83 = vector.broadcast %82 : vector<16x1xf32> to vector<16x16xf32>
    %84 = arith.subf %80, %83 : vector<16x16xf32>
    %85 = math.exp %84 : vector<16x16xf32>
    %cst_44 = arith.constant dense<0.000000e+00> : vector<16xf32>
    %86 = vector.multi_reduction <add>, %85, %cst_44 [1] : vector<16x16xf32> to vector<16xf32>
    %87 = vector.shape_cast %86 : vector<16xf32> to vector<16x1xf32>
    %88 = tpu.reciprocal %87 {approx = true} : vector<16x1xf32> -> vector<16x1xf32>
    %89 = vector.broadcast %88 : vector<16x1xf32> to vector<16x16xf32>
    %90 = arith.mulf %85, %89 : vector<16x16xf32>
    %91 = vector.extract_strided_slice %26 {offsets = [0, 96], sizes = [16, 32], strides = [1, 1]} : vector<16x128xf32> to vector<16x32xf32>
    %cst_45 = arith.constant dense<0.000000e+00> : vector<16x32xf32>
    %92 = tpu.matmul %90, %91, %cst_45 {dimension_numbers = #tpu.dot_dimension_numbers<[1], [0], [0], [1], [0, 0, 1, 1], [], []>} : vector<16x16xf32>, vector<16x32xf32>, vector<16x32xf32> -> vector<16x32xf32>
    %93 = arith.addf %76, %92 : vector<16x32xf32>
    %94 = vector.broadcast %17 : vector<1x32xf32> to vector<16x32xf32>
    %95 = arith.addf %93, %94 : vector<16x32xf32>
    %96 = arith.addf %10, %95 : vector<16x32xf32>
    %cst_46 = arith.constant dense<0.000000e+00> : vector<16xf32>
    %97 = vector.multi_reduction <add>, %96, %cst_46 [1] : vector<16x32xf32> to vector<16xf32>
    %98 = vector.shape_cast %97 : vector<16xf32> to vector<16x1xf32>
    %cst_47 = arith.constant 3.200000e+01 : f32
    %99 = vector.broadcast %cst_47 : f32 to vector<16x1xf32>
    %100 = arith.divf %98, %99 : vector<16x1xf32>
    %101 = vector.broadcast %100 : vector<16x1xf32> to vector<16x32xf32>
    %102 = arith.subf %96, %101 : vector<16x32xf32>
    %103 = arith.mulf %102, %102 : vector<16x32xf32>
    %cst_48 = arith.constant dense<0.000000e+00> : vector<16xf32>
    %104 = vector.multi_reduction <add>, %103, %cst_48 [1] : vector<16x32xf32> to vector<16xf32>
    %105 = vector.shape_cast %104 : vector<16xf32> to vector<16x1xf32>
    %cst_49 = arith.constant 3.200000e+01 : f32
    %106 = vector.broadcast %cst_49 : f32 to vector<16x1xf32>
    %107 = arith.divf %105, %106 : vector<16x1xf32>
    %108 = vector.broadcast %100 : vector<16x1xf32> to vector<16x32xf32>
    %109 = arith.subf %96, %108 : vector<16x32xf32>
    %cst_50 = arith.constant 9.99999974E-6 : f32
    %110 = vector.broadcast %cst_50 : f32 to vector<16x1xf32>
    %111 = arith.addf %107, %110 : vector<16x1xf32>
    %112 = math.rsqrt %111 : vector<16x1xf32>
    %113 = vector.broadcast %112 : vector<16x1xf32> to vector<16x32xf32>
    %114 = arith.mulf %109, %113 : vector<16x32xf32>
    %115 = vector.broadcast %19 : vector<1x32xf32> to vector<16x32xf32>
    %116 = arith.mulf %114, %115 : vector<16x32xf32>
    %117 = vector.broadcast %20 : vector<1x32xf32> to vector<16x32xf32>
    %118 = arith.addf %116, %117 : vector<16x32xf32>
    %cst_51 = arith.constant dense<0.000000e+00> : vector<16x64xf32>
    %119 = tpu.matmul %118, %12, %cst_51 {dimension_numbers = #tpu.dot_dimension_numbers<[1], [0], [0], [1], [0, 0, 1, 1], [], []>} : vector<16x32xf32>, vector<32x64xf32>, vector<16x64xf32> -> vector<16x64xf32>
    %120 = vector.broadcast %16 : vector<1x64xf32> to vector<16x64xf32>
    %121 = arith.addf %119, %120 : vector<16x64xf32>
    %cst_52 = arith.constant 0.000000e+00 : f32
    %122 = vector.broadcast %cst_52 : f32 to vector<16x64xf32>
    %123 = arith.maximumf %121, %122 : vector<16x64xf32>
    %cst_53 = arith.constant dense<0.000000e+00> : vector<16x32xf32>
    %124 = tpu.matmul %123, %14, %cst_53 {dimension_numbers = #tpu.dot_dimension_numbers<[1], [0], [0], [1], [0, 0, 1, 1], [], []>} : vector<16x64xf32>, vector<64x32xf32>, vector<16x32xf32> -> vector<16x32xf32>
    %125 = vector.broadcast %18 : vector<1x32xf32> to vector<16x32xf32>
    %126 = arith.addf %124, %125 : vector<16x32xf32>
    %127 = arith.addf %118, %126 : vector<16x32xf32>
    %cst_54 = arith.constant dense<0.000000e+00> : vector<16xf32>
    %128 = vector.multi_reduction <add>, %127, %cst_54 [1] : vector<16x32xf32> to vector<16xf32>
    %129 = vector.shape_cast %128 : vector<16xf32> to vector<16x1xf32>
    %cst_55 = arith.constant 3.200000e+01 : f32
    %130 = vector.broadcast %cst_55 : f32 to vector<16x1xf32>
    %131 = arith.divf %129, %130 : vector<16x1xf32>
    %132 = vector.broadcast %131 : vector<16x1xf32> to vector<16x32xf32>
    %133 = arith.subf %127, %132 : vector<16x32xf32>
    %134 = arith.mulf %133, %133 : vector<16x32xf32>
    %cst_56 = arith.constant dense<0.000000e+00> : vector<16xf32>
    %135 = vector.multi_reduction <add>, %134, %cst_56 [1] : vector<16x32xf32> to vector<16xf32>
    %136 = vector.shape_cast %135 : vector<16xf32> to vector<16x1xf32>
    %cst_57 = arith.constant 3.200000e+01 : f32
    %137 = vector.broadcast %cst_57 : f32 to vector<16x1xf32>
    %138 = arith.divf %136, %137 : vector<16x1xf32>
    %139 = vector.broadcast %131 : vector<16x1xf32> to vector<16x32xf32>
    %140 = arith.subf %127, %139 : vector<16x32xf32>
    %cst_58 = arith.constant 9.99999974E-6 : f32
    %141 = vector.broadcast %cst_58 : f32 to vector<16x1xf32>
    %142 = arith.addf %138, %141 : vector<16x1xf32>
    %143 = math.rsqrt %142 : vector<16x1xf32>
    %144 = vector.broadcast %143 : vector<16x1xf32> to vector<16x32xf32>
    %145 = arith.mulf %140, %144 : vector<16x32xf32>
    %146 = vector.broadcast %21 : vector<1x32xf32> to vector<16x32xf32>
    %147 = arith.mulf %145, %146 : vector<16x32xf32>
    %148 = vector.broadcast %22 : vector<1x32xf32> to vector<16x32xf32>
    %149 = arith.addf %147, %148 : vector<16x32xf32>
    %c136 = arith.constant 136 : index
    %c0_59 = arith.constant 0 : index
    %150 = vector.load %arg2[%c136, %c0_59] : memref<408x128xf32, #tpu.memory_space<vmem>>, vector<32x64xf32>
    %c136_60 = arith.constant 136 : index
    %c64_61 = arith.constant 64 : index
    %151 = vector.load %arg2[%c136_60, %c64_61] : memref<408x128xf32, #tpu.memory_space<vmem>>, vector<32x64xf32>
    %c168 = arith.constant 168 : index
    %c0_62 = arith.constant 0 : index
    %152 = vector.load %arg2[%c168, %c0_62] : memref<408x128xf32, #tpu.memory_space<vmem>>, vector<32x128xf32>
    %c200 = arith.constant 200 : index
    %c0_63 = arith.constant 0 : index
    %153 = vector.load %arg2[%c200, %c0_63] : memref<408x128xf32, #tpu.memory_space<vmem>>, vector<64x32xf32>
    %c264 = arith.constant 264 : index
    %c0_64 = arith.constant 0 : index
    %154 = vector.load %arg2[%c264, %c0_64] : memref<408x128xf32, #tpu.memory_space<vmem>>, vector<1x64xf32>
    %c264_65 = arith.constant 264 : index
    %c64_66 = arith.constant 64 : index
    %155 = vector.load %arg2[%c264_65, %c64_66] : memref<408x128xf32, #tpu.memory_space<vmem>>, vector<1x64xf32>
    %c265 = arith.constant 265 : index
    %c0_67 = arith.constant 0 : index
    %156 = vector.load %arg2[%c265, %c0_67] : memref<408x128xf32, #tpu.memory_space<vmem>>, vector<1x32xf32>
    %c265_68 = arith.constant 265 : index
    %c32_69 = arith.constant 32 : index
    %157 = vector.load %arg2[%c265_68, %c32_69] : memref<408x128xf32, #tpu.memory_space<vmem>>, vector<1x32xf32>
    %c265_70 = arith.constant 265 : index
    %c64_71 = arith.constant 64 : index
    %158 = vector.load %arg2[%c265_70, %c64_71] : memref<408x128xf32, #tpu.memory_space<vmem>>, vector<1x32xf32>
    %c265_72 = arith.constant 265 : index
    %c96_73 = arith.constant 96 : index
    %159 = vector.load %arg2[%c265_72, %c96_73] : memref<408x128xf32, #tpu.memory_space<vmem>>, vector<1x32xf32>
    %c266 = arith.constant 266 : index
    %c0_74 = arith.constant 0 : index
    %160 = vector.load %arg2[%c266, %c0_74] : memref<408x128xf32, #tpu.memory_space<vmem>>, vector<1x32xf32>
    %c266_75 = arith.constant 266 : index
    %c32_76 = arith.constant 32 : index
    %161 = vector.load %arg2[%c266_75, %c32_76] : memref<408x128xf32, #tpu.memory_space<vmem>>, vector<1x32xf32>
    %cst_77 = arith.constant dense<0.000000e+00> : vector<16x64xf32>
    %162 = tpu.matmul %149, %150, %cst_77 {dimension_numbers = #tpu.dot_dimension_numbers<[1], [0], [0], [1], [0, 0, 1, 1], [], []>} : vector<16x32xf32>, vector<32x64xf32>, vector<16x64xf32> -> vector<16x64xf32>
    %163 = vector.broadcast %154 : vector<1x64xf32> to vector<16x64xf32>
    %164 = arith.addf %162, %163 : vector<16x64xf32>
    %cst_78 = arith.constant dense<0.000000e+00> : vector<16x128xf32>
    %165 = tpu.matmul %149, %152, %cst_78 {dimension_numbers = #tpu.dot_dimension_numbers<[1], [0], [0], [1], [0, 0, 1, 1], [], []>} : vector<16x32xf32>, vector<32x128xf32>, vector<16x128xf32> -> vector<16x128xf32>
    %166 = vector.extract_strided_slice %164 {offsets = [0, 0], sizes = [16, 8], strides = [1, 1]} : vector<16x64xf32> to vector<16x8xf32>
    %167 = vector.extract_strided_slice %164 {offsets = [0, 32], sizes = [16, 8], strides = [1, 1]} : vector<16x64xf32> to vector<16x8xf32>
    %cst_79 = arith.constant dense<0.000000e+00> : vector<16x16xf32>
    %168 = tpu.matmul %166, %167, %cst_79 {dimension_numbers = #tpu.dot_dimension_numbers<[1], [1], [0], [0], [0, 0, 1, 0], [], []>} : vector<16x8xf32>, vector<16x8xf32>, vector<16x16xf32> -> vector<16x16xf32>
    %169 = arith.addf %168, %1 : vector<16x16xf32>
    %cst_80 = arith.constant dense<0xFF800000> : vector<16xf32>
    %170 = vector.multi_reduction <maximumf>, %169, %cst_80 [1] : vector<16x16xf32> to vector<16xf32>
    %171 = vector.shape_cast %170 : vector<16xf32> to vector<16x1xf32>
    %172 = vector.broadcast %171 : vector<16x1xf32> to vector<16x16xf32>
    %173 = arith.subf %169, %172 : vector<16x16xf32>
    %174 = math.exp %173 : vector<16x16xf32>
    %cst_81 = arith.constant dense<0.000000e+00> : vector<16xf32>
    %175 = vector.multi_reduction <add>, %174, %cst_81 [1] : vector<16x16xf32> to vector<16xf32>
    %176 = vector.shape_cast %175 : vector<16xf32> to vector<16x1xf32>
    %177 = tpu.reciprocal %176 {approx = true} : vector<16x1xf32> -> vector<16x1xf32>
    %178 = vector.broadcast %177 : vector<16x1xf32> to vector<16x16xf32>
    %179 = arith.mulf %174, %178 : vector<16x16xf32>
    %180 = vector.extract_strided_slice %165 {offsets = [0, 0], sizes = [16, 32], strides = [1, 1]} : vector<16x128xf32> to vector<16x32xf32>
    %cst_82 = arith.constant dense<0.000000e+00> : vector<16x32xf32>
    %181 = tpu.matmul %179, %180, %cst_82 {dimension_numbers = #tpu.dot_dimension_numbers<[1], [0], [0], [1], [0, 0, 1, 1], [], []>} : vector<16x16xf32>, vector<16x32xf32>, vector<16x32xf32> -> vector<16x32xf32>
    %182 = vector.extract_strided_slice %164 {offsets = [0, 8], sizes = [16, 8], strides = [1, 1]} : vector<16x64xf32> to vector<16x8xf32>
    %183 = vector.extract_strided_slice %164 {offsets = [0, 40], sizes = [16, 8], strides = [1, 1]} : vector<16x64xf32> to vector<16x8xf32>
    %cst_83 = arith.constant dense<0.000000e+00> : vector<16x16xf32>
    %184 = tpu.matmul %182, %183, %cst_83 {dimension_numbers = #tpu.dot_dimension_numbers<[1], [1], [0], [0], [0, 0, 1, 0], [], []>} : vector<16x8xf32>, vector<16x8xf32>, vector<16x16xf32> -> vector<16x16xf32>
    %185 = arith.addf %184, %1 : vector<16x16xf32>
    %cst_84 = arith.constant dense<0xFF800000> : vector<16xf32>
    %186 = vector.multi_reduction <maximumf>, %185, %cst_84 [1] : vector<16x16xf32> to vector<16xf32>
    %187 = vector.shape_cast %186 : vector<16xf32> to vector<16x1xf32>
    %188 = vector.broadcast %187 : vector<16x1xf32> to vector<16x16xf32>
    %189 = arith.subf %185, %188 : vector<16x16xf32>
    %190 = math.exp %189 : vector<16x16xf32>
    %cst_85 = arith.constant dense<0.000000e+00> : vector<16xf32>
    %191 = vector.multi_reduction <add>, %190, %cst_85 [1] : vector<16x16xf32> to vector<16xf32>
    %192 = vector.shape_cast %191 : vector<16xf32> to vector<16x1xf32>
    %193 = tpu.reciprocal %192 {approx = true} : vector<16x1xf32> -> vector<16x1xf32>
    %194 = vector.broadcast %193 : vector<16x1xf32> to vector<16x16xf32>
    %195 = arith.mulf %190, %194 : vector<16x16xf32>
    %196 = vector.extract_strided_slice %165 {offsets = [0, 32], sizes = [16, 32], strides = [1, 1]} : vector<16x128xf32> to vector<16x32xf32>
    %cst_86 = arith.constant dense<0.000000e+00> : vector<16x32xf32>
    %197 = tpu.matmul %195, %196, %cst_86 {dimension_numbers = #tpu.dot_dimension_numbers<[1], [0], [0], [1], [0, 0, 1, 1], [], []>} : vector<16x16xf32>, vector<16x32xf32>, vector<16x32xf32> -> vector<16x32xf32>
    %198 = arith.addf %181, %197 : vector<16x32xf32>
    %199 = vector.extract_strided_slice %164 {offsets = [0, 16], sizes = [16, 8], strides = [1, 1]} : vector<16x64xf32> to vector<16x8xf32>
    %200 = vector.extract_strided_slice %164 {offsets = [0, 48], sizes = [16, 8], strides = [1, 1]} : vector<16x64xf32> to vector<16x8xf32>
    %cst_87 = arith.constant dense<0.000000e+00> : vector<16x16xf32>
    %201 = tpu.matmul %199, %200, %cst_87 {dimension_numbers = #tpu.dot_dimension_numbers<[1], [1], [0], [0], [0, 0, 1, 0], [], []>} : vector<16x8xf32>, vector<16x8xf32>, vector<16x16xf32> -> vector<16x16xf32>
    %202 = arith.addf %201, %1 : vector<16x16xf32>
    %cst_88 = arith.constant dense<0xFF800000> : vector<16xf32>
    %203 = vector.multi_reduction <maximumf>, %202, %cst_88 [1] : vector<16x16xf32> to vector<16xf32>
    %204 = vector.shape_cast %203 : vector<16xf32> to vector<16x1xf32>
    %205 = vector.broadcast %204 : vector<16x1xf32> to vector<16x16xf32>
    %206 = arith.subf %202, %205 : vector<16x16xf32>
    %207 = math.exp %206 : vector<16x16xf32>
    %cst_89 = arith.constant dense<0.000000e+00> : vector<16xf32>
    %208 = vector.multi_reduction <add>, %207, %cst_89 [1] : vector<16x16xf32> to vector<16xf32>
    %209 = vector.shape_cast %208 : vector<16xf32> to vector<16x1xf32>
    %210 = tpu.reciprocal %209 {approx = true} : vector<16x1xf32> -> vector<16x1xf32>
    %211 = vector.broadcast %210 : vector<16x1xf32> to vector<16x16xf32>
    %212 = arith.mulf %207, %211 : vector<16x16xf32>
    %213 = vector.extract_strided_slice %165 {offsets = [0, 64], sizes = [16, 32], strides = [1, 1]} : vector<16x128xf32> to vector<16x32xf32>
    %cst_90 = arith.constant dense<0.000000e+00> : vector<16x32xf32>
    %214 = tpu.matmul %212, %213, %cst_90 {dimension_numbers = #tpu.dot_dimension_numbers<[1], [0], [0], [1], [0, 0, 1, 1], [], []>} : vector<16x16xf32>, vector<16x32xf32>, vector<16x32xf32> -> vector<16x32xf32>
    %215 = arith.addf %198, %214 : vector<16x32xf32>
    %216 = vector.extract_strided_slice %164 {offsets = [0, 24], sizes = [16, 8], strides = [1, 1]} : vector<16x64xf32> to vector<16x8xf32>
    %217 = vector.extract_strided_slice %164 {offsets = [0, 56], sizes = [16, 8], strides = [1, 1]} : vector<16x64xf32> to vector<16x8xf32>
    %cst_91 = arith.constant dense<0.000000e+00> : vector<16x16xf32>
    %218 = tpu.matmul %216, %217, %cst_91 {dimension_numbers = #tpu.dot_dimension_numbers<[1], [1], [0], [0], [0, 0, 1, 0], [], []>} : vector<16x8xf32>, vector<16x8xf32>, vector<16x16xf32> -> vector<16x16xf32>
    %219 = arith.addf %218, %1 : vector<16x16xf32>
    %cst_92 = arith.constant dense<0xFF800000> : vector<16xf32>
    %220 = vector.multi_reduction <maximumf>, %219, %cst_92 [1] : vector<16x16xf32> to vector<16xf32>
    %221 = vector.shape_cast %220 : vector<16xf32> to vector<16x1xf32>
    %222 = vector.broadcast %221 : vector<16x1xf32> to vector<16x16xf32>
    %223 = arith.subf %219, %222 : vector<16x16xf32>
    %224 = math.exp %223 : vector<16x16xf32>
    %cst_93 = arith.constant dense<0.000000e+00> : vector<16xf32>
    %225 = vector.multi_reduction <add>, %224, %cst_93 [1] : vector<16x16xf32> to vector<16xf32>
    %226 = vector.shape_cast %225 : vector<16xf32> to vector<16x1xf32>
    %227 = tpu.reciprocal %226 {approx = true} : vector<16x1xf32> -> vector<16x1xf32>
    %228 = vector.broadcast %227 : vector<16x1xf32> to vector<16x16xf32>
    %229 = arith.mulf %224, %228 : vector<16x16xf32>
    %230 = vector.extract_strided_slice %165 {offsets = [0, 96], sizes = [16, 32], strides = [1, 1]} : vector<16x128xf32> to vector<16x32xf32>
    %cst_94 = arith.constant dense<0.000000e+00> : vector<16x32xf32>
    %231 = tpu.matmul %229, %230, %cst_94 {dimension_numbers = #tpu.dot_dimension_numbers<[1], [0], [0], [1], [0, 0, 1, 1], [], []>} : vector<16x16xf32>, vector<16x32xf32>, vector<16x32xf32> -> vector<16x32xf32>
    %232 = arith.addf %215, %231 : vector<16x32xf32>
    %233 = vector.broadcast %156 : vector<1x32xf32> to vector<16x32xf32>
    %234 = arith.addf %232, %233 : vector<16x32xf32>
    %235 = arith.addf %149, %234 : vector<16x32xf32>
    %cst_95 = arith.constant dense<0.000000e+00> : vector<16xf32>
    %236 = vector.multi_reduction <add>, %235, %cst_95 [1] : vector<16x32xf32> to vector<16xf32>
    %237 = vector.shape_cast %236 : vector<16xf32> to vector<16x1xf32>
    %cst_96 = arith.constant 3.200000e+01 : f32
    %238 = vector.broadcast %cst_96 : f32 to vector<16x1xf32>
    %239 = arith.divf %237, %238 : vector<16x1xf32>
    %240 = vector.broadcast %239 : vector<16x1xf32> to vector<16x32xf32>
    %241 = arith.subf %235, %240 : vector<16x32xf32>
    %242 = arith.mulf %241, %241 : vector<16x32xf32>
    %cst_97 = arith.constant dense<0.000000e+00> : vector<16xf32>
    %243 = vector.multi_reduction <add>, %242, %cst_97 [1] : vector<16x32xf32> to vector<16xf32>
    %244 = vector.shape_cast %243 : vector<16xf32> to vector<16x1xf32>
    %cst_98 = arith.constant 3.200000e+01 : f32
    %245 = vector.broadcast %cst_98 : f32 to vector<16x1xf32>
    %246 = arith.divf %244, %245 : vector<16x1xf32>
    %247 = vector.broadcast %239 : vector<16x1xf32> to vector<16x32xf32>
    %248 = arith.subf %235, %247 : vector<16x32xf32>
    %cst_99 = arith.constant 9.99999974E-6 : f32
    %249 = vector.broadcast %cst_99 : f32 to vector<16x1xf32>
    %250 = arith.addf %246, %249 : vector<16x1xf32>
    %251 = math.rsqrt %250 : vector<16x1xf32>
    %252 = vector.broadcast %251 : vector<16x1xf32> to vector<16x32xf32>
    %253 = arith.mulf %248, %252 : vector<16x32xf32>
    %254 = vector.broadcast %158 : vector<1x32xf32> to vector<16x32xf32>
    %255 = arith.mulf %253, %254 : vector<16x32xf32>
    %256 = vector.broadcast %159 : vector<1x32xf32> to vector<16x32xf32>
    %257 = arith.addf %255, %256 : vector<16x32xf32>
    %cst_100 = arith.constant dense<0.000000e+00> : vector<16x64xf32>
    %258 = tpu.matmul %257, %151, %cst_100 {dimension_numbers = #tpu.dot_dimension_numbers<[1], [0], [0], [1], [0, 0, 1, 1], [], []>} : vector<16x32xf32>, vector<32x64xf32>, vector<16x64xf32> -> vector<16x64xf32>
    %259 = vector.broadcast %155 : vector<1x64xf32> to vector<16x64xf32>
    %260 = arith.addf %258, %259 : vector<16x64xf32>
    %cst_101 = arith.constant 0.000000e+00 : f32
    %261 = vector.broadcast %cst_101 : f32 to vector<16x64xf32>
    %262 = arith.maximumf %260, %261 : vector<16x64xf32>
    %cst_102 = arith.constant dense<0.000000e+00> : vector<16x32xf32>
    %263 = tpu.matmul %262, %153, %cst_102 {dimension_numbers = #tpu.dot_dimension_numbers<[1], [0], [0], [1], [0, 0, 1, 1], [], []>} : vector<16x64xf32>, vector<64x32xf32>, vector<16x32xf32> -> vector<16x32xf32>
    %264 = vector.broadcast %157 : vector<1x32xf32> to vector<16x32xf32>
    %265 = arith.addf %263, %264 : vector<16x32xf32>
    %266 = arith.addf %257, %265 : vector<16x32xf32>
    %cst_103 = arith.constant dense<0.000000e+00> : vector<16xf32>
    %267 = vector.multi_reduction <add>, %266, %cst_103 [1] : vector<16x32xf32> to vector<16xf32>
    %268 = vector.shape_cast %267 : vector<16xf32> to vector<16x1xf32>
    %cst_104 = arith.constant 3.200000e+01 : f32
    %269 = vector.broadcast %cst_104 : f32 to vector<16x1xf32>
    %270 = arith.divf %268, %269 : vector<16x1xf32>
    %271 = vector.broadcast %270 : vector<16x1xf32> to vector<16x32xf32>
    %272 = arith.subf %266, %271 : vector<16x32xf32>
    %273 = arith.mulf %272, %272 : vector<16x32xf32>
    %cst_105 = arith.constant dense<0.000000e+00> : vector<16xf32>
    %274 = vector.multi_reduction <add>, %273, %cst_105 [1] : vector<16x32xf32> to vector<16xf32>
    %275 = vector.shape_cast %274 : vector<16xf32> to vector<16x1xf32>
    %cst_106 = arith.constant 3.200000e+01 : f32
    %276 = vector.broadcast %cst_106 : f32 to vector<16x1xf32>
    %277 = arith.divf %275, %276 : vector<16x1xf32>
    %278 = vector.broadcast %270 : vector<16x1xf32> to vector<16x32xf32>
    %279 = arith.subf %266, %278 : vector<16x32xf32>
    %cst_107 = arith.constant 9.99999974E-6 : f32
    %280 = vector.broadcast %cst_107 : f32 to vector<16x1xf32>
    %281 = arith.addf %277, %280 : vector<16x1xf32>
    %282 = math.rsqrt %281 : vector<16x1xf32>
    %283 = vector.broadcast %282 : vector<16x1xf32> to vector<16x32xf32>
    %284 = arith.mulf %279, %283 : vector<16x32xf32>
    %285 = vector.broadcast %160 : vector<1x32xf32> to vector<16x32xf32>
    %286 = arith.mulf %284, %285 : vector<16x32xf32>
    %287 = vector.broadcast %161 : vector<1x32xf32> to vector<16x32xf32>
    %288 = arith.addf %286, %287 : vector<16x32xf32>
    %c272 = arith.constant 272 : index
    %c0_108 = arith.constant 0 : index
    %289 = vector.load %arg2[%c272, %c0_108] : memref<408x128xf32, #tpu.memory_space<vmem>>, vector<32x64xf32>
    %c272_109 = arith.constant 272 : index
    %c64_110 = arith.constant 64 : index
    %290 = vector.load %arg2[%c272_109, %c64_110] : memref<408x128xf32, #tpu.memory_space<vmem>>, vector<32x64xf32>
    %c304 = arith.constant 304 : index
    %c0_111 = arith.constant 0 : index
    %291 = vector.load %arg2[%c304, %c0_111] : memref<408x128xf32, #tpu.memory_space<vmem>>, vector<32x128xf32>
    %c336 = arith.constant 336 : index
    %c0_112 = arith.constant 0 : index
    %292 = vector.load %arg2[%c336, %c0_112] : memref<408x128xf32, #tpu.memory_space<vmem>>, vector<64x32xf32>
    %c400 = arith.constant 400 : index
    %c0_113 = arith.constant 0 : index
    %293 = vector.load %arg2[%c400, %c0_113] : memref<408x128xf32, #tpu.memory_space<vmem>>, vector<1x64xf32>
    %c400_114 = arith.constant 400 : index
    %c64_115 = arith.constant 64 : index
    %294 = vector.load %arg2[%c400_114, %c64_115] : memref<408x128xf32, #tpu.memory_space<vmem>>, vector<1x64xf32>
    %c401 = arith.constant 401 : index
    %c0_116 = arith.constant 0 : index
    %295 = vector.load %arg2[%c401, %c0_116] : memref<408x128xf32, #tpu.memory_space<vmem>>, vector<1x32xf32>
    %c401_117 = arith.constant 401 : index
    %c32_118 = arith.constant 32 : index
    %296 = vector.load %arg2[%c401_117, %c32_118] : memref<408x128xf32, #tpu.memory_space<vmem>>, vector<1x32xf32>
    %c401_119 = arith.constant 401 : index
    %c64_120 = arith.constant 64 : index
    %297 = vector.load %arg2[%c401_119, %c64_120] : memref<408x128xf32, #tpu.memory_space<vmem>>, vector<1x32xf32>
    %c401_121 = arith.constant 401 : index
    %c96_122 = arith.constant 96 : index
    %298 = vector.load %arg2[%c401_121, %c96_122] : memref<408x128xf32, #tpu.memory_space<vmem>>, vector<1x32xf32>
    %c402 = arith.constant 402 : index
    %c0_123 = arith.constant 0 : index
    %299 = vector.load %arg2[%c402, %c0_123] : memref<408x128xf32, #tpu.memory_space<vmem>>, vector<1x32xf32>
    %c402_124 = arith.constant 402 : index
    %c32_125 = arith.constant 32 : index
    %300 = vector.load %arg2[%c402_124, %c32_125] : memref<408x128xf32, #tpu.memory_space<vmem>>, vector<1x32xf32>
    %cst_126 = arith.constant dense<0.000000e+00> : vector<16x64xf32>
    %301 = tpu.matmul %288, %289, %cst_126 {dimension_numbers = #tpu.dot_dimension_numbers<[1], [0], [0], [1], [0, 0, 1, 1], [], []>} : vector<16x32xf32>, vector<32x64xf32>, vector<16x64xf32> -> vector<16x64xf32>
    %302 = vector.broadcast %293 : vector<1x64xf32> to vector<16x64xf32>
    %303 = arith.addf %301, %302 : vector<16x64xf32>
    %cst_127 = arith.constant dense<0.000000e+00> : vector<16x128xf32>
    %304 = tpu.matmul %288, %291, %cst_127 {dimension_numbers = #tpu.dot_dimension_numbers<[1], [0], [0], [1], [0, 0, 1, 1], [], []>} : vector<16x32xf32>, vector<32x128xf32>, vector<16x128xf32> -> vector<16x128xf32>
    %305 = vector.extract_strided_slice %303 {offsets = [0, 0], sizes = [16, 8], strides = [1, 1]} : vector<16x64xf32> to vector<16x8xf32>
    %306 = vector.extract_strided_slice %303 {offsets = [0, 32], sizes = [16, 8], strides = [1, 1]} : vector<16x64xf32> to vector<16x8xf32>
    %cst_128 = arith.constant dense<0.000000e+00> : vector<16x16xf32>
    %307 = tpu.matmul %305, %306, %cst_128 {dimension_numbers = #tpu.dot_dimension_numbers<[1], [1], [0], [0], [0, 0, 1, 0], [], []>} : vector<16x8xf32>, vector<16x8xf32>, vector<16x16xf32> -> vector<16x16xf32>
    %308 = arith.addf %307, %1 : vector<16x16xf32>
    %cst_129 = arith.constant dense<0xFF800000> : vector<16xf32>
    %309 = vector.multi_reduction <maximumf>, %308, %cst_129 [1] : vector<16x16xf32> to vector<16xf32>
    %310 = vector.shape_cast %309 : vector<16xf32> to vector<16x1xf32>
    %311 = vector.broadcast %310 : vector<16x1xf32> to vector<16x16xf32>
    %312 = arith.subf %308, %311 : vector<16x16xf32>
    %313 = math.exp %312 : vector<16x16xf32>
    %cst_130 = arith.constant dense<0.000000e+00> : vector<16xf32>
    %314 = vector.multi_reduction <add>, %313, %cst_130 [1] : vector<16x16xf32> to vector<16xf32>
    %315 = vector.shape_cast %314 : vector<16xf32> to vector<16x1xf32>
    %316 = tpu.reciprocal %315 {approx = true} : vector<16x1xf32> -> vector<16x1xf32>
    %317 = vector.broadcast %316 : vector<16x1xf32> to vector<16x16xf32>
    %318 = arith.mulf %313, %317 : vector<16x16xf32>
    %319 = vector.extract_strided_slice %304 {offsets = [0, 0], sizes = [16, 32], strides = [1, 1]} : vector<16x128xf32> to vector<16x32xf32>
    %cst_131 = arith.constant dense<0.000000e+00> : vector<16x32xf32>
    %320 = tpu.matmul %318, %319, %cst_131 {dimension_numbers = #tpu.dot_dimension_numbers<[1], [0], [0], [1], [0, 0, 1, 1], [], []>} : vector<16x16xf32>, vector<16x32xf32>, vector<16x32xf32> -> vector<16x32xf32>
    %321 = vector.extract_strided_slice %303 {offsets = [0, 8], sizes = [16, 8], strides = [1, 1]} : vector<16x64xf32> to vector<16x8xf32>
    %322 = vector.extract_strided_slice %303 {offsets = [0, 40], sizes = [16, 8], strides = [1, 1]} : vector<16x64xf32> to vector<16x8xf32>
    %cst_132 = arith.constant dense<0.000000e+00> : vector<16x16xf32>
    %323 = tpu.matmul %321, %322, %cst_132 {dimension_numbers = #tpu.dot_dimension_numbers<[1], [1], [0], [0], [0, 0, 1, 0], [], []>} : vector<16x8xf32>, vector<16x8xf32>, vector<16x16xf32> -> vector<16x16xf32>
    %324 = arith.addf %323, %1 : vector<16x16xf32>
    %cst_133 = arith.constant dense<0xFF800000> : vector<16xf32>
    %325 = vector.multi_reduction <maximumf>, %324, %cst_133 [1] : vector<16x16xf32> to vector<16xf32>
    %326 = vector.shape_cast %325 : vector<16xf32> to vector<16x1xf32>
    %327 = vector.broadcast %326 : vector<16x1xf32> to vector<16x16xf32>
    %328 = arith.subf %324, %327 : vector<16x16xf32>
    %329 = math.exp %328 : vector<16x16xf32>
    %cst_134 = arith.constant dense<0.000000e+00> : vector<16xf32>
    %330 = vector.multi_reduction <add>, %329, %cst_134 [1] : vector<16x16xf32> to vector<16xf32>
    %331 = vector.shape_cast %330 : vector<16xf32> to vector<16x1xf32>
    %332 = tpu.reciprocal %331 {approx = true} : vector<16x1xf32> -> vector<16x1xf32>
    %333 = vector.broadcast %332 : vector<16x1xf32> to vector<16x16xf32>
    %334 = arith.mulf %329, %333 : vector<16x16xf32>
    %335 = vector.extract_strided_slice %304 {offsets = [0, 32], sizes = [16, 32], strides = [1, 1]} : vector<16x128xf32> to vector<16x32xf32>
    %cst_135 = arith.constant dense<0.000000e+00> : vector<16x32xf32>
    %336 = tpu.matmul %334, %335, %cst_135 {dimension_numbers = #tpu.dot_dimension_numbers<[1], [0], [0], [1], [0, 0, 1, 1], [], []>} : vector<16x16xf32>, vector<16x32xf32>, vector<16x32xf32> -> vector<16x32xf32>
    %337 = arith.addf %320, %336 : vector<16x32xf32>
    %338 = vector.extract_strided_slice %303 {offsets = [0, 16], sizes = [16, 8], strides = [1, 1]} : vector<16x64xf32> to vector<16x8xf32>
    %339 = vector.extract_strided_slice %303 {offsets = [0, 48], sizes = [16, 8], strides = [1, 1]} : vector<16x64xf32> to vector<16x8xf32>
    %cst_136 = arith.constant dense<0.000000e+00> : vector<16x16xf32>
    %340 = tpu.matmul %338, %339, %cst_136 {dimension_numbers = #tpu.dot_dimension_numbers<[1], [1], [0], [0], [0, 0, 1, 0], [], []>} : vector<16x8xf32>, vector<16x8xf32>, vector<16x16xf32> -> vector<16x16xf32>
    %341 = arith.addf %340, %1 : vector<16x16xf32>
    %cst_137 = arith.constant dense<0xFF800000> : vector<16xf32>
    %342 = vector.multi_reduction <maximumf>, %341, %cst_137 [1] : vector<16x16xf32> to vector<16xf32>
    %343 = vector.shape_cast %342 : vector<16xf32> to vector<16x1xf32>
    %344 = vector.broadcast %343 : vector<16x1xf32> to vector<16x16xf32>
    %345 = arith.subf %341, %344 : vector<16x16xf32>
    %346 = math.exp %345 : vector<16x16xf32>
    %cst_138 = arith.constant dense<0.000000e+00> : vector<16xf32>
    %347 = vector.multi_reduction <add>, %346, %cst_138 [1] : vector<16x16xf32> to vector<16xf32>
    %348 = vector.shape_cast %347 : vector<16xf32> to vector<16x1xf32>
    %349 = tpu.reciprocal %348 {approx = true} : vector<16x1xf32> -> vector<16x1xf32>
    %350 = vector.broadcast %349 : vector<16x1xf32> to vector<16x16xf32>
    %351 = arith.mulf %346, %350 : vector<16x16xf32>
    %352 = vector.extract_strided_slice %304 {offsets = [0, 64], sizes = [16, 32], strides = [1, 1]} : vector<16x128xf32> to vector<16x32xf32>
    %cst_139 = arith.constant dense<0.000000e+00> : vector<16x32xf32>
    %353 = tpu.matmul %351, %352, %cst_139 {dimension_numbers = #tpu.dot_dimension_numbers<[1], [0], [0], [1], [0, 0, 1, 1], [], []>} : vector<16x16xf32>, vector<16x32xf32>, vector<16x32xf32> -> vector<16x32xf32>
    %354 = arith.addf %337, %353 : vector<16x32xf32>
    %355 = vector.extract_strided_slice %303 {offsets = [0, 24], sizes = [16, 8], strides = [1, 1]} : vector<16x64xf32> to vector<16x8xf32>
    %356 = vector.extract_strided_slice %303 {offsets = [0, 56], sizes = [16, 8], strides = [1, 1]} : vector<16x64xf32> to vector<16x8xf32>
    %cst_140 = arith.constant dense<0.000000e+00> : vector<16x16xf32>
    %357 = tpu.matmul %355, %356, %cst_140 {dimension_numbers = #tpu.dot_dimension_numbers<[1], [1], [0], [0], [0, 0, 1, 0], [], []>} : vector<16x8xf32>, vector<16x8xf32>, vector<16x16xf32> -> vector<16x16xf32>
    %358 = arith.addf %357, %1 : vector<16x16xf32>
    %cst_141 = arith.constant dense<0xFF800000> : vector<16xf32>
    %359 = vector.multi_reduction <maximumf>, %358, %cst_141 [1] : vector<16x16xf32> to vector<16xf32>
    %360 = vector.shape_cast %359 : vector<16xf32> to vector<16x1xf32>
    %361 = vector.broadcast %360 : vector<16x1xf32> to vector<16x16xf32>
    %362 = arith.subf %358, %361 : vector<16x16xf32>
    %363 = math.exp %362 : vector<16x16xf32>
    %cst_142 = arith.constant dense<0.000000e+00> : vector<16xf32>
    %364 = vector.multi_reduction <add>, %363, %cst_142 [1] : vector<16x16xf32> to vector<16xf32>
    %365 = vector.shape_cast %364 : vector<16xf32> to vector<16x1xf32>
    %366 = tpu.reciprocal %365 {approx = true} : vector<16x1xf32> -> vector<16x1xf32>
    %367 = vector.broadcast %366 : vector<16x1xf32> to vector<16x16xf32>
    %368 = arith.mulf %363, %367 : vector<16x16xf32>
    %369 = vector.extract_strided_slice %304 {offsets = [0, 96], sizes = [16, 32], strides = [1, 1]} : vector<16x128xf32> to vector<16x32xf32>
    %cst_143 = arith.constant dense<0.000000e+00> : vector<16x32xf32>
    %370 = tpu.matmul %368, %369, %cst_143 {dimension_numbers = #tpu.dot_dimension_numbers<[1], [0], [0], [1], [0, 0, 1, 1], [], []>} : vector<16x16xf32>, vector<16x32xf32>, vector<16x32xf32> -> vector<16x32xf32>
    %371 = arith.addf %354, %370 : vector<16x32xf32>
    %372 = vector.broadcast %295 : vector<1x32xf32> to vector<16x32xf32>
    %373 = arith.addf %371, %372 : vector<16x32xf32>
    %374 = arith.addf %288, %373 : vector<16x32xf32>
    %cst_144 = arith.constant dense<0.000000e+00> : vector<16xf32>
    %375 = vector.multi_reduction <add>, %374, %cst_144 [1] : vector<16x32xf32> to vector<16xf32>
    %376 = vector.shape_cast %375 : vector<16xf32> to vector<16x1xf32>
    %cst_145 = arith.constant 3.200000e+01 : f32
    %377 = vector.broadcast %cst_145 : f32 to vector<16x1xf32>
    %378 = arith.divf %376, %377 : vector<16x1xf32>
    %379 = vector.broadcast %378 : vector<16x1xf32> to vector<16x32xf32>
    %380 = arith.subf %374, %379 : vector<16x32xf32>
    %381 = arith.mulf %380, %380 : vector<16x32xf32>
    %cst_146 = arith.constant dense<0.000000e+00> : vector<16xf32>
    %382 = vector.multi_reduction <add>, %381, %cst_146 [1] : vector<16x32xf32> to vector<16xf32>
    %383 = vector.shape_cast %382 : vector<16xf32> to vector<16x1xf32>
    %cst_147 = arith.constant 3.200000e+01 : f32
    %384 = vector.broadcast %cst_147 : f32 to vector<16x1xf32>
    %385 = arith.divf %383, %384 : vector<16x1xf32>
    %386 = vector.broadcast %378 : vector<16x1xf32> to vector<16x32xf32>
    %387 = arith.subf %374, %386 : vector<16x32xf32>
    %cst_148 = arith.constant 9.99999974E-6 : f32
    %388 = vector.broadcast %cst_148 : f32 to vector<16x1xf32>
    %389 = arith.addf %385, %388 : vector<16x1xf32>
    %390 = math.rsqrt %389 : vector<16x1xf32>
    %391 = vector.broadcast %390 : vector<16x1xf32> to vector<16x32xf32>
    %392 = arith.mulf %387, %391 : vector<16x32xf32>
    %393 = vector.broadcast %297 : vector<1x32xf32> to vector<16x32xf32>
    %394 = arith.mulf %392, %393 : vector<16x32xf32>
    %395 = vector.broadcast %298 : vector<1x32xf32> to vector<16x32xf32>
    %396 = arith.addf %394, %395 : vector<16x32xf32>
    %cst_149 = arith.constant dense<0.000000e+00> : vector<16x64xf32>
    %397 = tpu.matmul %396, %290, %cst_149 {dimension_numbers = #tpu.dot_dimension_numbers<[1], [0], [0], [1], [0, 0, 1, 1], [], []>} : vector<16x32xf32>, vector<32x64xf32>, vector<16x64xf32> -> vector<16x64xf32>
    %398 = vector.broadcast %294 : vector<1x64xf32> to vector<16x64xf32>
    %399 = arith.addf %397, %398 : vector<16x64xf32>
    %cst_150 = arith.constant 0.000000e+00 : f32
    %400 = vector.broadcast %cst_150 : f32 to vector<16x64xf32>
    %401 = arith.maximumf %399, %400 : vector<16x64xf32>
    %cst_151 = arith.constant dense<0.000000e+00> : vector<16x32xf32>
    %402 = tpu.matmul %401, %292, %cst_151 {dimension_numbers = #tpu.dot_dimension_numbers<[1], [0], [0], [1], [0, 0, 1, 1], [], []>} : vector<16x64xf32>, vector<64x32xf32>, vector<16x32xf32> -> vector<16x32xf32>
    %403 = vector.broadcast %296 : vector<1x32xf32> to vector<16x32xf32>
    %404 = arith.addf %402, %403 : vector<16x32xf32>
    %405 = arith.addf %396, %404 : vector<16x32xf32>
    %cst_152 = arith.constant dense<0.000000e+00> : vector<16xf32>
    %406 = vector.multi_reduction <add>, %405, %cst_152 [1] : vector<16x32xf32> to vector<16xf32>
    %407 = vector.shape_cast %406 : vector<16xf32> to vector<16x1xf32>
    %cst_153 = arith.constant 3.200000e+01 : f32
    %408 = vector.broadcast %cst_153 : f32 to vector<16x1xf32>
    %409 = arith.divf %407, %408 : vector<16x1xf32>
    %410 = vector.broadcast %409 : vector<16x1xf32> to vector<16x32xf32>
    %411 = arith.subf %405, %410 : vector<16x32xf32>
    %412 = arith.mulf %411, %411 : vector<16x32xf32>
    %cst_154 = arith.constant dense<0.000000e+00> : vector<16xf32>
    %413 = vector.multi_reduction <add>, %412, %cst_154 [1] : vector<16x32xf32> to vector<16xf32>
    %414 = vector.shape_cast %413 : vector<16xf32> to vector<16x1xf32>
    %cst_155 = arith.constant 3.200000e+01 : f32
    %415 = vector.broadcast %cst_155 : f32 to vector<16x1xf32>
    %416 = arith.divf %414, %415 : vector<16x1xf32>
    %417 = vector.broadcast %409 : vector<16x1xf32> to vector<16x32xf32>
    %418 = arith.subf %405, %417 : vector<16x32xf32>
    %cst_156 = arith.constant 9.99999974E-6 : f32
    %419 = vector.broadcast %cst_156 : f32 to vector<16x1xf32>
    %420 = arith.addf %416, %419 : vector<16x1xf32>
    %421 = math.rsqrt %420 : vector<16x1xf32>
    %422 = vector.broadcast %421 : vector<16x1xf32> to vector<16x32xf32>
    %423 = arith.mulf %418, %422 : vector<16x32xf32>
    %424 = vector.broadcast %299 : vector<1x32xf32> to vector<16x32xf32>
    %425 = arith.mulf %423, %424 : vector<16x32xf32>
    %426 = vector.broadcast %300 : vector<1x32xf32> to vector<16x32xf32>
    %427 = arith.addf %425, %426 : vector<16x32xf32>
    %cst_157 = arith.constant dense<0.000000e+00> : vector<2x32xf32>
    %428 = tpu.matmul %2, %427, %cst_157 {dimension_numbers = #tpu.dot_dimension_numbers<[1], [0], [0], [1], [0, 0, 1, 1], [], []>} : vector<2x16xf32>, vector<16x32xf32>, vector<2x32xf32> -> vector<2x32xf32>
    %429 = vector.broadcast %4 : vector<1x32xf32> to vector<2x32xf32>
    %430 = arith.mulf %428, %429 : vector<2x32xf32>
    %cst_158 = arith.constant dense<0.000000e+00> : vector<2xf32>
    %431 = vector.multi_reduction <add>, %430, %cst_158 [1] : vector<2x32xf32> to vector<2xf32>
    %432 = vector.shape_cast %431 : vector<2xf32> to vector<2x1xf32>
    %433 = vector.broadcast %5 : vector<1x1xf32> to vector<2x1xf32>
    %434 = arith.addf %432, %433 : vector<2x1xf32>
    %c0_159 = arith.constant 0 : index
    %c0_160 = arith.constant 0 : index
    %435 = vector.load %arg3[%c0_159, %c0_160] : memref<2x1xf32, #tpu.memory_space<vmem>>, vector<2x1xf32>
    tpu.vector_store %arg3[%c0_159, %c0_160], %434 {strides = array<i32>} : memref<2x1xf32, #tpu.memory_space<vmem>>, vector<2x1xf32>,
    return
  }
}

</mosaic_0001>

<bundles_post_ra>
// kernel: tpu_custom_call.1
= control target key start
LH: loop header
LB: loop body
LE: loop exit
PB: predicated region body
PF: predicated region fallthrough
CT: control target
= control target key end

     0   :  { %8 = vsyncpa [#allocation3], 0  ;;  %s5271_s12 = smov [#allocation2]   ;;  %s5918_s0 = inlined_call_operand.vmem [shape: f32[16,1], index: 0, kind: input, shape index: {}]   ;;  %s5919_s1 = inlined_call_operand.vmem [shape: f32[16,128], index: 1, kind: input, shape index: {}]   ;;  %s5920_s2 = inlined_call_operand.hbm [shape: f32[408,128], index: 2, kind: input, shape index: {}]   ;;  %s5921_s3 = inlined_call_operand.vmem [shape: f32[2,1], index: 3, kind: output, shape index: {}]  }
   0x1   :  { %s18_s13 = sshll.u32 %s5271_s12, 4  ;;  %s5247_s16 = scalar_lea.hbm %s5920_s2, 6528  ;;  %s19_s13 = int_to_ptr.vmem [resolvable:$true] %s18_s13 }
   0x2   :  { %p5248_p0 = scmp.ne.s32.totalorder %s5920_s2, %s5247_s16  ;;  %p5251_p1 = scmp.lt.u32.totalorder %s5247_s16, %s5920_s2 }
   0x4   :  { %p5253_p2 = pnand %p5251_p1, %p5248_p0 }
   0x6   :  { %5256 = shalt.err (!%p5253_p2)
}
   0x7   :  { %s5257_s21 = scalar_lea.vmem %s19_s13, 6528  ;;  %p5262_p4 = scmp.lt.s32.totalorder %s19_s13, %s19_s13 }
   0x8   :  { %p5258_p3 = scmp.ne.s32.totalorder %s19_s13, %s5257_s21  ;;  %p5263_p5 = scmp.lt.s32.totalorder %s5257_s21, %s5257_s21 }
   0xa   :  { %p5264_p6 = por %p5263_p5, %p5262_p4 }
   0xc   :  { %p5265_p7 = pnand %p5264_p6, %p5258_p3 }
   0xe   :  { %5268 = shalt.err (!%p5265_p7)
}
   0xf   :  { %s5272_s22 = smov 128   ;;  %s5273_s23 = smov 8  }
  0x10   :  { %24 = dma.hbm_to_vmem [thread:$0]  %s5920_s2, 6528, %s19_s13, [#allocation3], %s5272_s22, %s5272_s22, %s5273_s23  }
  0x11   :  { %5269 = dma.done.wait [#allocation3], 6528  }
  0x12   :  { %5270 = vsyncadd [#allocation3], 4294960768  ;;  %v5274_v0 = vmov 0   ;;  %v33_v1 = vld [vmem:[%s5918_s0] sm:$0xff]  ;;  %s5275_s30 = smov 64   ;;  %v34_v3 = vld [vmem:[%s5918_s0 + $0x8] sm:$0xff] }
  0x13   :  { %4985 = vset.pattern.permute.xlu0 %v5274_v0  ;;  %v5325_v2 = vld [vmem:[%s5919_s1] sm:$0xff]  ;;  %v5335_v4 = vld [vmem:[%s5919_s1 + $0x8] sm:$0xff]  ;;  %v5347_v12 = vld [vmem:[#allocation2 + $0x10] sm:$0xff]  ;;  %vm90_vm0 = vcmask 261120   ;;  %vm257_vm1 = vcmask 64512   ;;  %s5276_s8 = smov 96  }
  0x14   :  { %37 = vperm.xlu0 %4985, %v33_v1   ;;  %53 = vrot.lane.b32.xlu1 %v5325_v2, %s5275_s30  ;;  %v5339_v5 = vld [vmem:[#allocation2] sm:$0xff]  ;;  %v5341_v6 = vld [vmem:[#allocation2 + $0x8] sm:$0xff]  ;;  %v5349_v13 = vld [vmem:[#allocation2 + $0x18] sm:$0xff]  ;;  %s5277_s9 = smov 88   ;;  %s5278_s10 = smov 120   ;;  %vm341_vm3 = vcmask 130048  }
  0x15   :  { %v65_v7 = vld [vmem:[#allocation2 + $0x20] sm:$0xff]  ;;  %v5021_v8 = vpack.i.bf16 %v5341_v6, %v5339_v5  ;;  %v4708_v9 = vpack.c.bf16 %v5341_v6, %v5339_v5  ;;  %v66_v10 = vld [vmem:[#allocation2 + $0x28] sm:$0xff]  ;;  %v67_v14 = vld [vmem:[#allocation2 + $0x30] sm:$0xff]  ;;  %v4712_v15 = vpack.c.bf16 %v5349_v13, %v5347_v12  ;;  %s5279_s11 = smov 72   ;;  %s5280_s12 = smov 80   ;;  %vm1225_vm4 = vcmask 523264  }
  0x16   :  { %v4716_v11 = vpack.c.bf16 %v66_v10, %v65_v7  ;;  %v68_v16 = vld [vmem:[#allocation2 + $0x38] sm:$0xff]  ;;  %v4086_v18 = vld [vmem:[%s5919_s1] ss:$0 sm:$0xff]  ;;  %s5281_s13 = smov 112   ;;  %s5282_s14 = smov 104   ;;  %vm5393_vm2 = vmpackc.low %vm257_vm1, %vm257_vm1  ;;  %vm5285_vm5 = vmmov 0  }
  0x17   :  { %4709 = vmatprep.subr.bf16.mxu0 %v4708_v9  ;;  %v4720_v17 = vpack.c.bf16 %v68_v16, %v67_v14  ;;  %v5368_v29 = vld [vmem:[#allocation2 + $0x80] ss:$0 sm:$0xff]  ;;  %s5283_s15 = smov 32   ;;  %vm4070_vm6 = vcmask 254976   ;;  %vm4079_vm7 = vcmask 1024  }
  0x18   :  { %42 = vperm.xlu0 %4985, %v34_v3   ;;  %55 = vrot.lane.b32.xlu1 %v5335_v4, %s5275_s30 }
  0x19   :  { %4717 = vmatprep.subr.bf16.mxu1 %v4716_v11  ;;  %4711 = vmatpush3.bf16.msra.mxu0 %v4708_v9 }
  0x1a   :  { %4719 = vmatpush3.bf16.msra.mxu1 %v4716_v11  ;;  %4713 = vmatprep.subr.bf16.mxu0 %v4712_v15 }
  0x1b   :  { %4721 = vmatprep.subr.bf16.mxu1 %v4720_v17 }
  0x1d   :  { %4715 = vmatpush3.bf16.msra.mxu0 %v4712_v15 }
  0x1e   :  { %4723 = vmatpush3.bf16.msra.mxu1 %v4720_v17 }
  0x86   :  { %v54_v19 = vpop.permute.xlu1 %53 }
  0x8a   :  { %v56_v24 = vpop.permute.xlu1 %55 }
  0x93   :  { %v38_v20 = vpop.permute.xlu0 %37 }
  0x94   :  { %v49_v21 = vmul.f32 %v4086_v18, %v38_v20 }
  0x96   :  { %v5356_v22 = vadd.f32 %v54_v19, %v49_v21 }
  0x97   :  { %v43_v23 = vpop.permute.xlu0 %42 }
  0x98   :  { %v50_v25 = vmul.f32 %v4086_v18, %v43_v23  ;;  %86 = vrot.lane.b32.xlu0 %v5356_v22, %s5275_s30 }
  0x9a   :  { %v5360_v26 = vadd.f32 %v56_v24, %v50_v25 }
  0x9c   :  { %88 = vrot.lane.b32.xlu1 %v5360_v26, %s5275_s30 }
 0x10a   :  { %v87_v27 = vpop.permute.xlu0 %86 }
 0x10b   :  { %4385 = vmatprep.mubr.msk.f32.mxu0 %vm90_vm0, %v87_v27  ;;  %4396 = vmatprep.mubr.msk.f32.mxu1 %vm90_vm0, %v87_v27 }
 0x10e   :  { %v89_v28 = vpop.permute.xlu1 %88 }
 0x10f   :  { %4386 = vmatmul.mubr.msk.f32.vlgmr.msra.gmra.mrb[0].mxu0 %vm90_vm0, %v89_v28  ;;  %4397 = vmatmul.mubr.msk.f32.vlgmr.msra.gmra.mrb[0].mxu1 %vm90_vm0, %v89_v28 }
 0x1e2   :  { %v4387_v30 = vpop.f32.mrb[0].mxu0  ;;  %v4398_v31 = vpop.f32.mrb[0].mxu1 }
 0x1e3   :  { %v167_v32 = vadd.f32 %v4387_v30, %v5368_v29  ;;  %v161_v33 = vpop.f32.mrb[1].mxu0  ;;  %v236_v34 = vpop.f32.mrb[1].mxu1 }
 0x1e4   :  { %v162_v35 = vadd.f32 %v5368_v29, %v161_v33  ;;  %v5372_v36 = vpack.i.bf16 %v4398_v31, %v236_v34  ;;  %v5374_v37 = vpack.c.bf16 %v4398_v31, %v236_v34 }
 0x1e6   :  { %4403 = vmatprep.mubr.msk.f32.mxu0 %vm257_vm1, %v162_v35  ;;  %v4991_v38 = vpack.i.bf16 %v167_v32, %v162_v35 }
 0x1e8   :  { %4992 = vrot.lane.b32.xlu1 %v4991_v38, %s5276_s8  ;;  %4987 = vrot.lane.b32.xlu0 %v4991_v38, %s5277_s9 }
 0x1ec   :  { %366 = vrot.lane.b32.xlu1 %v167_v32, %s5278_s10  ;;  %364 = vrot.lane.b32.xlu0 %v162_v35, %s5278_s10 }
 0x1f0   :  { %5002 = vrot.lane.b32.xlu1 %v4991_v38, %s5279_s11  ;;  %4997 = vrot.lane.b32.xlu0 %v4991_v38, %s5280_s12 }
 0x1f4   :  { %649 = vrot.lane.b32.xlu1 %v167_v32, %s5281_s13  ;;  %647 = vrot.lane.b32.xlu0 %v162_v35, %s5281_s13 }
 0x1f8   :  { %851 = vrot.lane.b32.xlu1 %v167_v32, %s5282_s14  ;;  %849 = vrot.lane.b32.xlu0 %v162_v35, %s5282_s14 }
 0x1fc   :  { %253 = vrot.lane.b32.xlu1 %v5335_v4, %s5276_s8  ;;  %251 = vrot.lane.b32.xlu0 %v5325_v2, %s5276_s8 }
 0x25a   :  { %v4993_v39 = vpop.permute.xlu1 %4992  ;;  %v4988_v40 = vpop.permute.xlu0 %4987 }
 0x25b   :  { %v4995_v41 = vunpack.i.h.bf16 %v4993_v39  ;;  %v4994_v42 = vunpack.i.l.bf16 %v4993_v39  ;;  %v4990_v43 = vunpack.i.h.bf16 %v4988_v40  ;;  %v4989_v44 = vunpack.i.l.bf16 %v4988_v40 }
 0x25d   :  { %v4724_v46 = vpack.c.bf16 %v4995_v41, %v4994_v42  ;;  %v4730_v47 = vpack.c.bf16 %v4990_v43, %v4989_v44 }
 0x25e   :  { %v367_v48 = vpop.permute.xlu1 %366  ;;  %v365_v49 = vpop.permute.xlu0 %364 }
 0x25f   :  { %4726 = vmatprep.subr.msk.bf16.mxu0 %vm5393_vm2, %v4724_v46  ;;  %4732 = vmatprep.subr.msk.bf16.mxu1 %vm5393_vm2, %v4730_v47 }
 0x260   :  { %4410 = vmatprep.mubr.msk.f32.mxu1 %vm257_vm1, %v365_v49  ;;  %4729 = vmatpush3.bf16.xpose.msk.msra.mxu0 %vm5393_vm2, %v4724_v46 }
 0x261   :  { %4735 = vmatpush3.bf16.xpose.msk.msra.mxu1 %vm5393_vm2, %v4730_v47 }
 0x262   :  { %v5003_v50 = vpop.permute.xlu1 %5002  ;;  %v4998_v51 = vpop.permute.xlu0 %4997 }
 0x263   :  { %v5000_v52 = vunpack.i.h.bf16 %v4998_v51  ;;  %v4999_v53 = vunpack.i.l.bf16 %v4998_v51  ;;  %v5005_v54 = vunpack.i.h.bf16 %v5003_v50  ;;  %v5004_v55 = vunpack.i.l.bf16 %v5003_v50 }
 0x265   :  { %v4744_v56 = vpack.c.bf16 %v5000_v52, %v4999_v53  ;;  %v4754_v58 = vpack.c.bf16 %v5005_v54, %v5004_v55 }
 0x266   :  { %v648_v57 = vpop.permute.xlu0 %647  ;;  %v650_v59 = vpop.permute.xlu1 %649 }
 0x267   :  { %4404 = vmatmul.mubr.msk.f32.vlgmr.msra.gmra.mrb[2].mxu0 %vm257_vm1, %v167_v32  ;;  %4746 = vmatprep.subr.msk.bf16.mxu1 %vm5393_vm2, %v4744_v56 }
 0x268   :  { %4411 = vmatmul.mubr.msk.f32.vlgmr.msra.gmra.mrb[2].mxu1 %vm257_vm1, %v367_v48 }
 0x269   :  { %4749 = vmatpush3.bf16.xpose.msk.msra.mxu1 %vm5393_vm2, %v4744_v56  ;;  %4431 = vmatprep.mubr.msk.f32.mxu1 %vm257_vm1, %v648_v57 }
 0x26a   :  { %4756 = vmatprep.subr.msk.bf16.mxu1 %vm5393_vm2, %v4754_v58  ;;  %v850_v60 = vpop.permute.xlu0 %849  ;;  %v852_v61 = vpop.permute.xlu1 %851 }
 0x26e   :  { %v5420_v62 = vpop.permute.xlu1 %253  ;;  %v5422_v0 = vpop.permute.xlu0 %251 }
 0x270   :  { %4432 = vmatmul.mubr.msk.f32.vlgmr.msra.gmra.mrb[4].mxu1 %vm257_vm1, %v650_v59 }
 0x271   :  { %4759 = vmatpush3.bf16.xpose.msk.msra.mxu1 %vm5393_vm2, %v4754_v58  ;;  %4445 = vmatprep.mubr.msk.f32.mxu1 %vm257_vm1, %v850_v60 }
 0x278   :  { %4446 = vmatmul.mubr.msk.f32.vlgmr.msra.gmra.mrb[6].mxu1 %vm257_vm1, %v852_v61 }
 0x33a   :  { %v4405_v63 = vpop.f32.mrb[2].mxu0 }
 0x33b   :  { %v4412_v1 = vpop.f32.mrb[2].mxu1  ;;  %v332_v2 = vpop.f32.mrb[3].mxu0  ;;  %v338_v14 = vadd.f32 %v4405_v63, %v5420_v62 }
 0x33c   :  { %v452_v3 = vadd.f32 %v4412_v1, %v5420_v62  ;;  %v446_v4 = vpop.f32.mrb[3].mxu1  ;;  %v5428_v10 = vadd.f32 %v332_v2, %v5422_v0 }
 0x33d   :  { %v447_v7 = vadd.f32 %v446_v4, %v5422_v0  ;;  %v345_v21 = vsel %vm341_vm3, %v338_v14, -inf }
 0x33e   :  { %v458_v9 = vsel %vm341_vm3, %v452_v3, -inf  ;;  %v342_v16 = vsel %vm341_vm3, %v5428_v10, -inf }
 0x33f   :  { %459 = vmax.xlane.f32.xlu1 %v458_v9  ;;  %v455_v11 = vsel %vm341_vm3, %v447_v7, -inf }
 0x340   :  { %456 = vmax.xlane.f32.xlu0 %v455_v11 }
 0x343   :  { %v4433_v15 = vpop.f32.mrb[4].mxu1 }
 0x344   :  { %v729_v17 = vpop.f32.mrb[5].mxu1  ;;  %343 = vmax.xlane.f32.xlu0 %v342_v16  ;;  %v735_v19 = vadd.f32 %v4433_v15, %v5420_v62 }
 0x345   :  { %v5435_v18 = vadd.f32 %v729_v17, %v5422_v0 }
 0x346   :  { %v741_v24 = vsel %vm341_vm3, %v735_v19, -inf }
 0x347   :  { %v738_v20 = vsel %vm341_vm3, %v5435_v18, -inf }
 0x348   :  { %739 = vmax.xlane.f32.xlu1 %v738_v20  ;;  %346 = vmax.xlane.f32.xlu0 %v345_v21 }
 0x34b   :  { %v4447_v23 = vpop.f32.mrb[6].mxu1 }
 0x34c   :  { %v937_v25 = vadd.f32 %v4447_v23, %v5420_v62  ;;  %v931_v27 = vpop.f32.mrb[7].mxu1  ;;  %742 = vmax.xlane.f32.xlu0 %v741_v24 }
 0x34d   :  { %v932_v28 = vadd.f32 %v931_v27, %v5422_v0 }
 0x34e   :  { %v943_v30 = vsel %vm341_vm3, %v937_v25, -inf }
 0x34f   :  { %v940_v31 = vsel %vm341_vm3, %v932_v28, -inf }
 0x350   :  { %941 = vmax.xlane.f32.xlu1 %v940_v31  ;;  %944 = vmax.xlane.f32.xlu0 %v943_v30 }
 0x3cc   :  { %v460_v32 = vpop.xlane.xlu1 %459 }
 0x3cd   :  { %v462_v33 = vsub.f32 %v452_v3, %v460_v32  ;;  %v457_v34 = vpop.xlane.xlu0 %456 }
 0x3ce   :  { %v461_v35 = vsub.f32 %v447_v7, %v457_v34 }
 0x3cf   :  { %v465_v38 = vmul.f32 1.442695, %v462_v33 }
 0x3d0   :  { %v463_v39 = vmul.f32 1.442695, %v461_v35 }
 0x3d1   :  { %5126 = vpow2.f32 %v465_v38  ;;  %v344_v40 = vpop.xlane.xlu0 %343 }
 0x3d2   :  { %5128 = vpow2.f32 %v463_v39  ;;  %v348_v7 = vsub.f32 %v5428_v10, %v344_v40 }
 0x3d4   :  { %v350_v9 = vmul.f32 1.442695, %v348_v7 }
 0x3d5   :  { %v347_v41 = vpop.xlane.xlu0 %346  ;;  %v740_v44 = vpop.xlane.xlu1 %739 }
 0x3d6   :  { %v349_v42 = vsub.f32 %v338_v14, %v347_v41  ;;  %v744_v11 = vsub.f32 %v5435_v18, %v740_v44 }
 0x3d8   :  { %v352_v43 = vmul.f32 1.442695, %v349_v42  ;;  %v746_v14 = vmul.f32 1.442695, %v744_v11 }
 0x3d9   :  { %v743_v46 = vpop.xlane.xlu0 %742 }
 0x3da   :  { %v745_v47 = vsub.f32 %v735_v19, %v743_v46  ;;  %5130 = vpow2.f32 %v352_v43 }
 0x3db   :  { %v5127_v48 = vpop.eup %5126 }
 0x3dc   :  { %v5129_v49 = vpop.eup %5128  ;;  %v748_v50 = vmul.f32 1.442695, %v745_v47  ;;  %v470_v51 = vsel %vm341_vm3, %v5127_v48, 0.0 }
 0x3dd   :  { %v942_v52 = vpop.xlane.xlu1 %941  ;;  %471 = vadd.xlane.f32.xlu0 %v470_v51  ;;  %v945_v53 = vpop.xlane.xlu0 %944  ;;  %v467_v54 = vsel %vm341_vm3, %v5129_v49, 0.0 }
 0x3de   :  { %5132 = vpow2.f32 %v748_v50  ;;  %v946_v55 = vsub.f32 %v932_v28, %v942_v52  ;;  %v947_v56 = vsub.f32 %v937_v25, %v945_v53  ;;  %468 = vadd.xlane.f32.xlu1 %v467_v54 }
 0x3e0   :  { %v950_v57 = vmul.f32 1.442695, %v947_v56  ;;  %v948_v58 = vmul.f32 1.442695, %v946_v55 }
 0x3e2   :  { %5134 = vpow2.f32 %v950_v57 }
 0x3e3   :  { %5136 = vpow2.f32 %v948_v58  ;;  %v5488_v58 = vld [vmem:[#allocation2 + $0x81] ss:$0 sm:$0xff] }
 0x3e4   :  { %v5448_v59 = vpop.eup %5130  ;;  %5138 = vpow2.f32 %v350_v9 }
 0x3e5   :  { %v357_v60 = vsel %vm341_vm3, %v5448_v59, 0.0  ;;  %5140 = vpow2.f32 %v746_v14 }
 0x3e6   :  { %358 = vadd.xlane.f32.xlu0 %v357_v60 }
 0x3e8   :  { %v5452_v61 = vpop.eup %5132 }
 0x3e9   :  { %v753_v63 = vsel %vm341_vm3, %v5452_v61, 0.0 }
 0x3ea   :  { %754 = vadd.xlane.f32.xlu0 %v753_v63 }
 0x3ec   :  { %v5456_v1 = vpop.eup %5134 }
 0x3ed   :  { %v955_v2 = vsel %vm341_vm3, %v5456_v1, 0.0  ;;  %v5460_v3 = vpop.eup %5136 }
 0x3ee   :  { %956 = vadd.xlane.f32.xlu0 %v955_v2  ;;  %v952_v4 = vsel %vm341_vm3, %v5460_v3, 0.0  ;;  %v5139_v15 = vpop.eup %5138 }
 0x3ef   :  { %5007 = vrot.lane.b32.xlu1 %v5372_v36, %s5276_s8  ;;  %v354_v16 = vsel %vm341_vm3, %v5139_v15, 0.0  ;;  %v5141_v17 = vpop.eup %5140 }
 0x3f0   :  { %v750_v19 = vsel %vm341_vm3, %v5141_v17, 0.0 }
 0x3f2   :  { %953 = vadd.xlane.f32.xlu0 %v952_v4 }
 0x408   :  { %5012 = vrot.lane.b32.xlu0 %v5372_v36, %s5275_s30 }
 0x413   :  { %355 = vadd.xlane.f32.xlu1 %v354_v16 }
 0x417   :  { %751 = vadd.xlane.f32.xlu1 %v750_v19 }
 0x428   :  { %5017 = vrot.lane.b32.xlu1 %v5372_v36, %s5283_s15 }
 0x46a   :  { %v472_v10 = vpop.xlane.xlu0 %471 }
 0x46b   :  { %5142 = vrcp.f32 %v472_v10  ;;  %v469_v18 = vpop.xlane.xlu1 %468 }
 0x46c   :  { %5144 = vrcp.f32 %v469_v18 }
 0x46f   :  { %v5008_v20 = vpop.permute.xlu1 %5007 }
 0x470   :  { %v5010_v21 = vunpack.i.h.bf16 %v5008_v20  ;;  %v5009_v23 = vunpack.i.l.bf16 %v5008_v20 }
 0x472   :  { %v4736_v24 = vpack.c.bf16 %v5010_v21, %v5009_v23 }
 0x473   :  { %v359_v25 = vpop.xlane.xlu0 %358 }
 0x474   :  { %4737 = vmatprep.subr.bf16.mxu0 %v4736_v24  ;;  %5146 = vrcp.f32 %v359_v25  ;;  %v5026_v25 = vpack.i.bf16 %v5349_v13, %v5347_v12 }
 0x475   :  { %v5143_v27 = vpop.eup %5142  ;;  %4739 = vmatpush3.bf16.msra.mxu0 %v4736_v24 }
 0x476   :  { %v5145_v28 = vpop.eup %5144  ;;  %4741 = vmatprep.subr.bf16.mxu0 %v5374_v37  ;;  %v476_v32 = vmul.f32 %v5143_v27, %v5127_v48 }
 0x477   :  { %v475_v30 = vmul.f32 %v5145_v28, %v5129_v49  ;;  %v755_v31 = vpop.xlane.xlu0 %754 }
 0x479   :  { %4417 = vmatprep.mubr.msk.f32.mxu0 %vm341_vm3, %v475_v30 }
 0x47a   :  { %4418 = vmatmul.mubr.msk.f32.vlgmr.msra.gmra.mrb[4].mxu0 %vm341_vm3, %v476_v32 }
 0x47b   :  { %4743 = vmatpush3.bf16.msra.mxu0 %v5374_v37  ;;  %v957_v36 = vpop.xlane.xlu0 %956 }
 0x47e   :  { %v5147_v43 = vpop.eup %5146 }
 0x47f   :  { %v954_v33 = vpop.xlane.xlu0 %953  ;;  %v363_v48 = vmul.f32 %v5147_v43, %v5448_v59 }
 0x483   :  { %v5013_v34 = vpop.permute.xlu0 %5012 }
 0x484   :  { %v5015_v35 = vunpack.i.h.bf16 %v5013_v34  ;;  %v5014_v38 = vunpack.i.l.bf16 %v5013_v34 }
 0x486   :  { %v4750_v39 = vpack.c.bf16 %v5015_v35, %v5014_v38  ;;  %v69_v38 = vld [vmem:[#allocation2 + $0x40] sm:$0xff] }
 0x488   :  { %4751 = vmatprep.subr.bf16.mxu0 %v4750_v39 }
 0x4a0   :  { %v356_v40 = vpop.xlane.xlu1 %355 }
 0x4a1   :  { %5148 = vrcp.f32 %v356_v40  ;;  %v71_v40 = vld [vmem:[#allocation2 + $0x50] sm:$0xff] }
 0x4a4   :  { %v752_v41 = vpop.xlane.xlu1 %751 }
 0x4a5   :  { %5150 = vrcp.f32 %v752_v41 }
 0x4a6   :  { %5152 = vrcp.f32 %v755_v31 }
 0x4a7   :  { %5154 = vrcp.f32 %v954_v33 }
 0x4a8   :  { %v5018_v42 = vpop.permute.xlu1 %5017  ;;  %5156 = vrcp.f32 %v957_v36 }
 0x4a9   :  { %v5020_v46 = vunpack.i.h.bf16 %v5018_v42  ;;  %v5019_v47 = vunpack.i.l.bf16 %v5018_v42  ;;  %v72_v42 = vld [vmem:[#allocation2 + $0x58] sm:$0xff] }
 0x4ab   :  { %v5149_v44 = vpop.eup %5148  ;;  %v4760_v50 = vpack.c.bf16 %v5020_v46, %v5019_v47  ;;  %v73_v46 = vld [vmem:[#allocation2 + $0x60] sm:$0xff]  ;;  %v74_v47 = vld [vmem:[#allocation2 + $0x68] sm:$0xff] }
 0x4ac   :  { %v362_v37 = vmul.f32 %v5149_v44, %v5139_v15  ;;  %v4776_v44 = vpack.c.bf16 %v72_v42, %v71_v40 }
 0x4ae   :  { %4424 = vmatprep.mubr.msk.f32.mxu0 %vm341_vm3, %v362_v37 }
 0x4af   :  { %v5151_v49 = vpop.eup %5150  ;;  %4425 = vmatmul.mubr.msk.f32.vlgmr.msra.gmra.mrb[4].mxu0 %vm341_vm3, %v363_v48 }
 0x4b0   :  { %4753 = vmatpush3.bf16.msra.mxu0 %v4750_v39  ;;  %v758_v51 = vmul.f32 %v5151_v49, %v5141_v17  ;;  %v5153_v52 = vpop.eup %5152  ;;  %v70_v39 = vld [vmem:[#allocation2 + $0x48] sm:$0xff] }
 0x4b1   :  { %4761 = vmatprep.subr.bf16.mxu0 %v4760_v50  ;;  %v5155_v53 = vpop.eup %5154  ;;  %v759_v54 = vmul.f32 %v5153_v52, %v5452_v61  ;;  %v4772_v41 = vpack.c.bf16 %v70_v39, %v69_v38 }
 0x4b2   :  { %4438 = vmatprep.mubr.msk.f32.mxu0 %vm341_vm3, %v758_v51  ;;  %v960_v55 = vmul.f32 %v5155_v53, %v5460_v3  ;;  %v5157_v56 = vpop.eup %5156 }
 0x4b3   :  { %v961_v57 = vmul.f32 %v5157_v56, %v5456_v1  ;;  %4773 = vmatprep.subr.bf16.mxu1 %v4772_v41 }
 0x4b4   :  { %4775 = vmatpush3.bf16.msra.mxu1 %v4772_v41 }
 0x4b5   :  { %4777 = vmatprep.subr.bf16.mxu1 %v4776_v44 }
 0x4b7   :  { %4439 = vmatmul.mubr.msk.f32.vlgmr.msra.gmra.mrb[4].mxu0 %vm341_vm3, %v759_v54 }
 0x4b8   :  { %4763 = vmatpush3.bf16.msra.mxu0 %v4760_v50  ;;  %4452 = vmatprep.mubr.msk.f32.mxu0 %vm341_vm3, %v960_v55  ;;  %v4780_v50 = vpack.c.bf16 %v74_v47, %v73_v46  ;;  %v1378_v47 = vld [vmem:[#allocation2 + $0xa8] sm:$0xff] }
 0x4b9   :  { %4779 = vmatpush3.bf16.msra.mxu1 %v4776_v44 }
 0x4ba   :  { %4781 = vmatprep.subr.bf16.mxu1 %v4780_v50 }
 0x4bd   :  { %4783 = vmatpush3.bf16.msra.mxu1 %v4780_v50 }
 0x4bf   :  { %4453 = vmatmul.mubr.msk.f32.vlgmr.msra.gmra.mrb[4].mxu0 %vm341_vm3, %v961_v57 }
 0x592   :  { %v4454_v59 = vpop.f32.mrb[4].mxu0 }
 0x593   :  { %v1040_v60 = vpop.f32.mrb[5].mxu0  ;;  %v1056_v61 = vadd.f32 %v4454_v59, %v5488_v58  ;;  %v75_v59 = vld [vmem:[#allocation2 + $0x70] sm:$0xff] }
 0x594   :  { %v1055_v63 = vadd.f32 %v5488_v58, %v1040_v60  ;;  %v76_v60 = vld [vmem:[#allocation2 + $0x78] sm:$0xff] }
 0x596   :  { %1059 = vrot.lane.b32.xlu1 %v1055_v63, %s5275_s30  ;;  %v4784_v63 = vpack.c.bf16 %v76_v60, %v75_v59  ;;  %v1380_v60 = vld [vmem:[#allocation2 + $0xb8] sm:$0xff] }
 0x598   :  { %4785 = vmatprep.subr.bf16.mxu1 %v4784_v63 }
 0x599   :  { %4787 = vmatpush3.bf16.msra.mxu1 %v4784_v63  ;;  %v1381_v63 = vld [vmem:[#allocation2 + $0xc0] sm:$0xff] }
 0x59a   :  { %1061 = vrot.lane.b32.xlu1 %v1056_v61, %s5275_s30 }
 0x608   :  { %v1060_v2 = vpop.permute.xlu1 %1059 }
 0x609   :  { %v1065_v3 = vadd.f32 %v1060_v2, %v5356_v22 }
 0x60b   :  { %1069 = vrot.lane.b32.xlu1 %v1065_v3, %s5275_s30 }
 0x60c   :  { %v1062_v1 = vpop.permute.xlu1 %1061 }
 0x60d   :  { %v1066_v4 = vadd.f32 %v1062_v1, %v5360_v26 }
 0x60f   :  { %1071 = vrot.lane.b32.xlu0 %v1066_v4, %s5275_s30 }
 0x67d   :  { %v1070_v7 = vpop.permute.xlu1 %1069 }
 0x67e   :  { %v1075_v9 = vsel %vm90_vm0, %v1070_v7, 0.0 }
 0x67f   :  { %1076 = vadd.xlane.f32.xlu1 %v1075_v9 }
 0x681   :  { %v1072_v11 = vpop.permute.xlu0 %1071 }
 0x682   :  { %v1078_v14 = vsel %vm90_vm0, %v1072_v11, 0.0 }
 0x683   :  { %1079 = vadd.xlane.f32.xlu0 %v1078_v14 }
 0x70c   :  { %v1077_v15 = vpop.xlane.xlu1 %1076 }
 0x70d   :  { %v1082_v16 = vmul.f32 0.03125, %v1077_v15 }
 0x70f   :  { %v1084_v17 = vsub.f32 %v1065_v3, %v1082_v16 }
 0x710   :  { %v1080_v19 = vpop.xlane.xlu0 %1079 }
 0x711   :  { %v1083_v22 = vmul.f32 0.03125, %v1080_v19  ;;  %v1086_v10 = vmul.f32 %v1084_v17, %v1084_v17 }
 0x713   :  { %v1085_v18 = vsub.f32 %v1066_v4, %v1083_v22  ;;  %1090 = vrot.lane.b32.xlu0 %v1086_v10, %s5275_s30 }
 0x715   :  { %v1087_v26 = vmul.f32 %v1085_v18, %v1085_v18 }
 0x717   :  { %1092 = vrot.lane.b32.xlu1 %v1087_v26, %s5275_s30 }
 0x785   :  { %v1091_v20 = vpop.permute.xlu0 %1090 }
 0x786   :  { %v1096_v21 = vsel %vm90_vm0, %v1091_v20, 0.0 }
 0x787   :  { %1097 = vadd.xlane.f32.xlu1 %v1096_v21 }
 0x789   :  { %v1093_v23 = vpop.permute.xlu1 %1092 }
 0x78a   :  { %v1099_v24 = vsel %vm90_vm0, %v1093_v23, 0.0 }
 0x78b   :  { %1100 = vadd.xlane.f32.xlu0 %v1099_v24 }
 0x798   :  { %5022 = vrot.lane.b32.xlu1 %v5021_v8, %s5275_s30 }
 0x79c   :  { %5027 = vrot.lane.b32.xlu1 %v5026_v25, %s5275_s30 }
 0x7a1   :  { %1113 = vrot.lane.b32.xlu0 %v5488_v58, %s5276_s8 }
 0x814   :  { %v1098_v27 = vpop.xlane.xlu1 %1097 }
 0x815   :  { %v1102_v28 = vmul.f32 0.03125, %v1098_v27 }
 0x817   :  { %v1104_v30 = vadd.f32 1e-05, %v1102_v28 }
 0x818   :  { %v1101_v31 = vpop.xlane.xlu0 %1100  ;;  %v5023_v32 = vpop.permute.xlu1 %5022 }
 0x819   :  { %5158 = vrsqrt.f32 %v1104_v30  ;;  %v1103_v36 = vmul.f32 0.03125, %v1101_v31  ;;  %v5025_v33 = vunpack.i.h.bf16 %v5023_v32  ;;  %v5024_v34 = vunpack.i.l.bf16 %v5023_v32 }
 0x81b   :  { %v1105_v35 = vadd.f32 1e-05, %v1103_v36  ;;  %v4764_v5 = vpack.c.bf16 %v5025_v33, %v5024_v34  ;;  %v4121_v34 = vld [vmem:[#allocation2 + $0x82] ss:$0 sm:$0xff] }
 0x81c   :  { %v5028_v6 = vpop.permute.xlu1 %5027  ;;  %v1114_v48 = vpop.permute.xlu0 %1113 }
 0x81d   :  { %5160 = vrsqrt.f32 %v1105_v35  ;;  %v5030_v8 = vunpack.i.h.bf16 %v5028_v6  ;;  %v5029_v12 = vunpack.i.l.bf16 %v5028_v6  ;;  %4765 = vmatprep.subr.bf16.mxu0 %v4764_v5  ;;  %v5535_v35 = vld [vmem:[#allocation2 + $0x88] sm:$0xff]  ;;  %v5539_v6 = vld [vmem:[#allocation2 + $0x98] sm:$0xff] }
 0x81e   :  { %4767 = vmatpush3.bf16.msra.mxu0 %v4764_v5  ;;  %v5537_v5 = vld [vmem:[#allocation2 + $0x90] sm:$0xff] }
 0x81f   :  { %v4768_v13 = vpack.c.bf16 %v5030_v8, %v5029_v12  ;;  %v5066_v8 = vpack.i.bf16 %v5537_v5, %v5535_v35  ;;  %v4788_v12 = vpack.c.bf16 %v5537_v5, %v5535_v35 }
 0x821   :  { %4769 = vmatprep.subr.bf16.mxu0 %v4768_v13 }
 0x822   :  { %4771 = vmatpush3.bf16.msra.mxu0 %v4768_v13  ;;  %v5545_v13 = vld [vmem:[#allocation2 + $0xa0] sm:$0xff] }
 0x823   :  { %v5159_v43 = vpop.eup %5158  ;;  %v5071_v38 = vpack.i.bf16 %v5545_v13, %v5539_v6  ;;  %v4792_v39 = vpack.c.bf16 %v5545_v13, %v5539_v6  ;;  %4789 = vmatprep.subr.bf16.mxu0 %v4788_v12  ;;  %v1382_v6 = vld [vmem:[#allocation2 + $0xc8] sm:$0xff]  ;;  %v1383_v13 = vld [vmem:[#allocation2 + $0xd0] sm:$0xff] }
 0x824   :  { %v1108_v37 = vmul.f32 %v5159_v43, %v1084_v17 }
 0x826   :  { %v1110_v49 = vmul.f32 %v5488_v58, %v1108_v37  ;;  %v1379_v37 = vld [vmem:[#allocation2 + $0xb0] sm:$0xff] }
 0x827   :  { %v5161_v51 = vpop.eup %5160 }
 0x828   :  { %v1116_v52 = vadd.f32 %v1114_v48, %v1110_v49  ;;  %v1109_v53 = vmul.f32 %v5161_v51, %v1085_v18 }
 0x82a   :  { %1120 = vrot.lane.b32.xlu0 %v1116_v52, %s5275_s30  ;;  %v1111_v54 = vmul.f32 %v5488_v58, %v1109_v53 }
 0x82c   :  { %v1117_v55 = vadd.f32 %v1114_v48, %v1111_v54 }
 0x82e   :  { %1122 = vrot.lane.b32.xlu1 %v1117_v55, %s5275_s30  ;;  %1141 = vrot.lane.b32.xlu0 %v5368_v29, %s5275_s30 }
 0x89c   :  { %v1121_v56 = vpop.permute.xlu0 %1120 }
 0x89d   :  { %4463 = vmatprep.mubr.msk.f32.mxu0 %vm90_vm0, %v1121_v56 }
 0x8a0   :  { %v1123_v57 = vpop.permute.xlu1 %1122  ;;  %v1142_v58 = vpop.permute.xlu0 %1141 }
 0x8a1   :  { %4464 = vmatmul.mubr.msk.f32.vlgmr.msra.gmra.mrb[6].mxu0 %vm90_vm0, %v1123_v57 }
 0x8a2   :  { %4791 = vmatpush3.bf16.msra.mxu0 %v4788_v12 }
 0x8a3   :  { %4793 = vmatprep.subr.bf16.mxu0 %v4792_v39 }
 0x8a6   :  { %4795 = vmatpush3.bf16.msra.mxu0 %v4792_v39 }
 0x974   :  { %v4465_v61 = vpop.f32.mrb[6].mxu0 }
 0x975   :  { %v1220_v2 = vadd.f32 %v4465_v61, %v1142_v58  ;;  %v1214_v3 = vpop.f32.mrb[7].mxu0  ;;  %v4800_v61 = vpack.c.bf16 %v1381_v63, %v1380_v60 }
 0x976   :  { %v1215_v1 = vadd.f32 %v1214_v3, %v1142_v58  ;;  %v5563_v3 = vld [vmem:[#allocation2 + $0x108] ss:$0 sm:$0xff] }
 0x977   :  { %v1224_v7 = vmax.f32 %v1220_v2, 0.0 }
 0x978   :  { %v1223_v4 = vmax.f32 %v1215_v1, 0.0 }
 0x97a   :  { %4482 = vmatprep.mubr.msk.f32.mxu1 %vm1225_vm4, %v1223_v4 }
 0x97b   :  { %4483 = vmatmul.mubr.msk.f32.vlgmr.msra.gmra.mrb[8].mxu1 %vm1225_vm4, %v1224_v7 }
 0xa4e   :  { %v4484_v29 = vpop.f32.mrb[8].mxu1 }
 0xa4f   :  { %v1304_v9 = vadd.f32 %v4484_v29, %v1114_v48  ;;  %v1298_v11 = vpop.f32.mrb[9].mxu1 }
 0xa50   :  { %v1299_v14 = vadd.f32 %v1298_v11, %v1114_v48  ;;  %v4796_v48 = vpack.c.bf16 %v1379_v37, %v1378_v47 }
 0xa51   :  { %1311 = vrot.lane.b32.xlu0 %v1304_v9, %s5275_s30 }
 0xa52   :  { %1309 = vrot.lane.b32.xlu1 %v1299_v14, %s5275_s30  ;;  %4797 = vmatprep.subr.bf16.mxu0 %v4796_v48 }
 0xac3   :  { %v1312_v15 = vpop.permute.xlu0 %1311 }
 0xac4   :  { %v1316_v16 = vadd.f32 %v1312_v15, %v1117_v55  ;;  %v1310_v17 = vpop.permute.xlu1 %1309 }
 0xac5   :  { %v1315_v19 = vadd.f32 %v1310_v17, %v1116_v52 }
 0xac6   :  { %1321 = vrot.lane.b32.xlu0 %v1316_v16, %s5275_s30 }
 0xac7   :  { %1319 = vrot.lane.b32.xlu1 %v1315_v19, %s5275_s30 }
 0xb38   :  { %v1322_v22 = vpop.permute.xlu0 %1321 }
 0xb39   :  { %v1320_v10 = vpop.permute.xlu1 %1319  ;;  %v1328_v18 = vsel %vm90_vm0, %v1322_v22, 0.0 }
 0xb3a   :  { %1329 = vadd.xlane.f32.xlu0 %v1328_v18  ;;  %v1325_v26 = vsel %vm90_vm0, %v1320_v10, 0.0 }
 0xb3b   :  { %1326 = vadd.xlane.f32.xlu1 %v1325_v26 }
 0xbc7   :  { %v1330_v20 = vpop.xlane.xlu0 %1329 }
 0xbc8   :  { %v1332_v21 = vmul.f32 0.03125, %v1330_v20  ;;  %v1327_v23 = vpop.xlane.xlu1 %1326 }
 0xbc9   :  { %v1331_v24 = vmul.f32 0.03125, %v1327_v23 }
 0xbca   :  { %v1334_v25 = vsub.f32 %v1316_v16, %v1332_v21 }
 0xbcb   :  { %v1333_v27 = vsub.f32 %v1315_v19, %v1331_v24 }
 0xbcc   :  { %v1336_v28 = vmul.f32 %v1334_v25, %v1334_v25 }
 0xbcd   :  { %v1335_v30 = vmul.f32 %v1333_v27, %v1333_v27 }
 0xbce   :  { %1341 = vrot.lane.b32.xlu1 %v1336_v28, %s5275_s30 }
 0xbcf   :  { %1339 = vrot.lane.b32.xlu0 %v1335_v30, %s5275_s30 }
 0xc40   :  { %v1342_v31 = vpop.permute.xlu1 %1341 }
 0xc41   :  { %v1340_v32 = vpop.permute.xlu0 %1339  ;;  %v1348_v36 = vsel %vm90_vm0, %v1342_v31, 0.0 }
 0xc42   :  { %1349 = vadd.xlane.f32.xlu0 %v1348_v36  ;;  %v1345_v33 = vsel %vm90_vm0, %v1340_v32, 0.0 }
 0xc43   :  { %1346 = vadd.xlane.f32.xlu1 %v1345_v33 }
 0xc54   :  { %1369 = vrot.lane.b32.xlu1 %v4121_v34, %s5283_s15 }
 0xc58   :  { %1364 = vrot.lane.b32.xlu0 %v4121_v34, %s5275_s30 }
 0xccf   :  { %v1350_v40 = vpop.xlane.xlu0 %1349 }
 0xcd0   :  { %v1352_v41 = vmul.f32 0.03125, %v1350_v40  ;;  %v1347_v42 = vpop.xlane.xlu1 %1346 }
 0xcd1   :  { %v1351_v43 = vmul.f32 0.03125, %v1347_v42 }
 0xcd2   :  { %v1354_v44 = vadd.f32 1e-05, %v1352_v41 }
 0xcd3   :  { %v1353_v46 = vadd.f32 1e-05, %v1351_v43  ;;  %v1365_v50 = vpop.permute.xlu0 %1364 }
 0xcd4   :  { %5162 = vrsqrt.f32 %v1354_v44  ;;  %v1370_v54 = vpop.permute.xlu1 %1369 }
 0xcd5   :  { %5164 = vrsqrt.f32 %v1353_v46 }
 0xcde   :  { %v5163_v49 = vpop.eup %5162 }
 0xcdf   :  { %v5165_v51 = vpop.eup %5164  ;;  %v1358_v52 = vmul.f32 %v5163_v49, %v1334_v25 }
 0xce0   :  { %v1357_v53 = vmul.f32 %v5165_v51, %v1333_v27 }
 0xce1   :  { %v1368_v55 = vmul.f32 %v1365_v50, %v1358_v52 }
 0xce2   :  { %v1367_v56 = vmul.f32 %v1365_v50, %v1357_v53 }
 0xce3   :  { %v5551_v57 = vadd.f32 %v1370_v54, %v1368_v55 }
 0xce4   :  { %v5553_v59 = vadd.f32 %v1370_v54, %v1367_v56 }
 0xce5   :  { %1401 = vrot.lane.b32.xlu0 %v5551_v57, %s5275_s30 }
 0xce6   :  { %1399 = vrot.lane.b32.xlu1 %v5553_v59, %s5275_s30 }
 0xd57   :  { %v1402_v2 = vpop.permute.xlu0 %1401 }
 0xd58   :  { %v1400_v58 = vpop.permute.xlu1 %1399 }
 0xd59   :  { %4493 = vmatprep.mubr.msk.f32.mxu0 %vm90_vm0, %v1400_v58 }
 0xd5a   :  { %4494 = vmatmul.mubr.msk.f32.vlgmr.msra.gmra.mrb[8].mxu0 %vm90_vm0, %v1402_v2 }
 0xd5b   :  { %4799 = vmatpush3.bf16.msra.mxu0 %v4796_v48  ;;  %4504 = vmatprep.mubr.msk.f32.mxu0 %vm90_vm0, %v1400_v58 }
 0xd5c   :  { %4801 = vmatprep.subr.bf16.mxu0 %v4800_v61 }
 0xd5f   :  { %4803 = vmatpush3.bf16.msra.mxu0 %v4800_v61 }
 0xd62   :  { %4505 = vmatmul.mubr.msk.f32.vlgmr.msra.gmra.mrb[10].mxu0 %vm90_vm0, %v1402_v2 }
 0xe2d   :  { %v4495_v1 = vpop.f32.mrb[8].mxu0 }
 0xe2e   :  { %v5566_v4 = vadd.f32 %v4495_v1, %v5563_v3  ;;  %v1473_v7 = vpop.f32.mrb[9].mxu0 }
 0xe2f   :  { %v5569_v29 = vadd.f32 %v5563_v3, %v1473_v7 }
 0xe31   :  { %4511 = vmatprep.mubr.msk.f32.mxu1 %vm257_vm1, %v5569_v29  ;;  %v5575_v9 = vpack.i.bf16 %v5566_v4, %v5569_v29 }
 0xe33   :  { %5037 = vrot.lane.b32.xlu0 %v5575_v9, %s5276_s8  ;;  %5032 = vrot.lane.b32.xlu1 %v5575_v9, %s5277_s9 }
 0xe35   :  { %v4506_v11 = vpop.f32.mrb[10].mxu0 }
 0xe36   :  { %v1548_v14 = vpop.f32.mrb[11].mxu0 }
 0xe37   :  { %1670 = vrot.lane.b32.xlu0 %v5566_v4, %s5278_s10  ;;  %1668 = vrot.lane.b32.xlu1 %v5569_v29, %s5278_s10  ;;  %v5585_v15 = vpack.i.bf16 %v4506_v11, %v1548_v14  ;;  %v5587_v16 = vpack.c.bf16 %v4506_v11, %v1548_v14 }
 0xe3b   :  { %1951 = vrot.lane.b32.xlu0 %v5569_v29, %s5281_s13  ;;  %5042 = vrot.lane.b32.xlu1 %v5575_v9, %s5280_s12 }
 0xe3f   :  { %1953 = vrot.lane.b32.xlu1 %v5566_v4, %s5281_s13 }
 0xea5   :  { %v5038_v17 = vpop.permute.xlu0 %5037  ;;  %v5033_v19 = vpop.permute.xlu1 %5032 }
 0xea6   :  { %v5040_v22 = vunpack.i.h.bf16 %v5038_v17  ;;  %v5039_v10 = vunpack.i.l.bf16 %v5038_v17  ;;  %v5035_v18 = vunpack.i.h.bf16 %v5033_v19  ;;  %v5034_v26 = vunpack.i.l.bf16 %v5033_v19 }
 0xea8   :  { %v4804_v20 = vpack.c.bf16 %v5040_v22, %v5039_v10  ;;  %v4810_v21 = vpack.c.bf16 %v5035_v18, %v5034_v26 }
 0xea9   :  { %v1669_v23 = vpop.permute.xlu1 %1668  ;;  %v1671_v24 = vpop.permute.xlu0 %1670 }
 0xeaa   :  { %4806 = vmatprep.subr.msk.bf16.mxu1 %vm5393_vm2, %v4804_v20  ;;  %4812 = vmatprep.subr.msk.bf16.mxu0 %vm5393_vm2, %v4810_v21 }
 0xeab   :  { %4518 = vmatprep.mubr.msk.f32.mxu0 %vm257_vm1, %v1669_v23  ;;  %4809 = vmatpush3.bf16.xpose.msk.msra.mxu1 %vm5393_vm2, %v4804_v20 }
 0xeac   :  { %4815 = vmatpush3.bf16.xpose.msk.msra.mxu0 %vm5393_vm2, %v4810_v21 }
 0xead   :  { %v5043_v25 = vpop.permute.xlu1 %5042  ;;  %v1952_v31 = vpop.permute.xlu0 %1951 }
 0xeae   :  { %v5045_v27 = vunpack.i.h.bf16 %v5043_v25  ;;  %v5044_v28 = vunpack.i.l.bf16 %v5043_v25 }
 0xeb0   :  { %v4824_v30 = vpack.c.bf16 %v5045_v27, %v5044_v28 }
 0xeb1   :  { %v1954_v32 = vpop.permute.xlu1 %1953 }
 0xeb2   :  { %4512 = vmatmul.mubr.msk.f32.vlgmr.msra.gmra.mrb[10].mxu1 %vm257_vm1, %v5566_v4  ;;  %4826 = vmatprep.subr.msk.bf16.mxu0 %vm5393_vm2, %v4824_v30 }
 0xeb3   :  { %4519 = vmatmul.mubr.msk.f32.vlgmr.msra.gmra.mrb[12].mxu0 %vm257_vm1, %v1671_v24 }
 0xeb4   :  { %4829 = vmatpush3.bf16.xpose.msk.msra.mxu0 %vm5393_vm2, %v4824_v30  ;;  %4539 = vmatprep.mubr.msk.f32.mxu0 %vm257_vm1, %v1952_v31 }
 0xebb   :  { %4540 = vmatmul.mubr.msk.f32.vlgmr.msra.gmra.mrb[14].mxu0 %vm257_vm1, %v1954_v32 }
 0xf85   :  { %v4513_v36 = vpop.f32.mrb[10].mxu1 }
 0xf86   :  { %v4520_v33 = vpop.f32.mrb[12].mxu0  ;;  %v1637_v34 = vpop.f32.mrb[11].mxu1  ;;  %v1643_v44 = vadd.f32 %v4513_v36, %v5420_v62 }
 0xf87   :  { %v1756_v12 = vadd.f32 %v4520_v33, %v5420_v62  ;;  %v1750_v39 = vpop.f32.mrb[13].mxu0  ;;  %v1638_v42 = vadd.f32 %v1637_v34, %v5422_v0 }
 0xf88   :  { %v1751_v40 = vadd.f32 %v1750_v39, %v5422_v0  ;;  %v1649_v51 = vsel %vm341_vm3, %v1643_v44, -inf }
 0xf89   :  { %v1762_v41 = vsel %vm341_vm3, %v1756_v12, -inf  ;;  %v1646_v47 = vsel %vm341_vm3, %v1638_v42, -inf }
 0xf8a   :  { %1763 = vmax.xlane.f32.xlu1 %v1762_v41  ;;  %v1759_v43 = vsel %vm341_vm3, %v1751_v40, -inf }
 0xf8b   :  { %1760 = vmax.xlane.f32.xlu0 %v1759_v43 }
 0xf8e   :  { %v4541_v46 = vpop.f32.mrb[14].mxu0 }
 0xf8f   :  { %v2033_v37 = vpop.f32.mrb[15].mxu0  ;;  %1647 = vmax.xlane.f32.xlu0 %v1646_v47  ;;  %v2039_v49 = vadd.f32 %v4541_v46, %v5420_v62 }
 0xf90   :  { %v2034_v48 = vadd.f32 %v2033_v37, %v5422_v0 }
 0xf91   :  { %v2045_v52 = vsel %vm341_vm3, %v2039_v49, -inf }
 0xf92   :  { %v2042_v50 = vsel %vm341_vm3, %v2034_v48, -inf }
 0xf93   :  { %2043 = vmax.xlane.f32.xlu1 %v2042_v50  ;;  %1650 = vmax.xlane.f32.xlu0 %v1649_v51 }
 0xf97   :  { %2046 = vmax.xlane.f32.xlu0 %v2045_v52 }
 0xfa4   :  { %5047 = vrot.lane.b32.xlu1 %v5585_v15, %s5276_s8 }
0x1017   :  { %v1764_v53 = vpop.xlane.xlu1 %1763 }
0x1018   :  { %v1766_v54 = vsub.f32 %v1756_v12, %v1764_v53  ;;  %v1761_v55 = vpop.xlane.xlu0 %1760 }
0x1019   :  { %v1765_v56 = vsub.f32 %v1751_v40, %v1761_v55 }
0x101a   :  { %v1769_v60 = vmul.f32 1.442695, %v1766_v54 }
0x101b   :  { %v1767_v63 = vmul.f32 1.442695, %v1765_v56 }
0x101c   :  { %5166 = vpow2.f32 %v1769_v60  ;;  %v1648_v58 = vpop.xlane.xlu0 %1647 }
0x101d   :  { %5168 = vpow2.f32 %v1767_v63  ;;  %v1652_v61 = vsub.f32 %v1638_v42, %v1648_v58 }
0x101f   :  { %v1654_v2 = vmul.f32 1.442695, %v1652_v61 }
0x1020   :  { %v2044_v1 = vpop.xlane.xlu1 %2043  ;;  %v1651_v7 = vpop.xlane.xlu0 %1650 }
0x1021   :  { %5170 = vpow2.f32 %v1654_v2  ;;  %v1653_v11 = vsub.f32 %v1643_v44, %v1651_v7  ;;  %v2048_v33 = vsub.f32 %v2034_v48, %v2044_v1 }
0x1023   :  { %v1656_v14 = vmul.f32 1.442695, %v1653_v11  ;;  %v2050_v34 = vmul.f32 1.442695, %v2048_v33 }
0x1024   :  { %v5048_v17 = vpop.permute.xlu1 %5047  ;;  %v2047_v19 = vpop.xlane.xlu0 %2046 }
0x1025   :  { %v5050_v22 = vunpack.i.h.bf16 %v5048_v17  ;;  %v5049_v10 = vunpack.i.l.bf16 %v5048_v17  ;;  %v2049_v18 = vsub.f32 %v2039_v49, %v2047_v19  ;;  %5172 = vpow2.f32 %v1656_v14 }
0x1026   :  { %v5167_v26 = vpop.eup %5166 }
0x1027   :  { %v5169_v20 = vpop.eup %5168  ;;  %v2052_v21 = vmul.f32 1.442695, %v2049_v18  ;;  %v1774_v23 = vsel %vm341_vm3, %v5167_v26, 0.0  ;;  %v4816_v24 = vpack.c.bf16 %v5050_v22, %v5049_v10 }
0x1028   :  { %1775 = vadd.xlane.f32.xlu0 %v1774_v23  ;;  %v1771_v25 = vsel %vm341_vm3, %v5169_v20, 0.0 }
0x1029   :  { %5174 = vpow2.f32 %v2052_v21  ;;  %4817 = vmatprep.subr.bf16.mxu1 %v4816_v24  ;;  %1772 = vadd.xlane.f32.xlu1 %v1771_v25 }
0x102a   :  { %4819 = vmatpush3.bf16.msra.mxu1 %v4816_v24  ;;  %5176 = vpow2.f32 %v2050_v34 }
0x102b   :  { %v5171_v27 = vpop.eup %5170  ;;  %4821 = vmatprep.subr.bf16.mxu1 %v5587_v16 }
0x102c   :  { %v1658_v28 = vsel %vm341_vm3, %v5171_v27, 0.0 }
0x102d   :  { %1659 = vadd.xlane.f32.xlu1 %v1658_v28 }
0x102f   :  { %v5173_v30 = vpop.eup %5172 }
0x1030   :  { %v1661_v31 = vsel %vm341_vm3, %v5173_v30, 0.0 }
0x1031   :  { %1662 = vadd.xlane.f32.xlu0 %v1661_v31 }
0x1033   :  { %v5175_v32 = vpop.eup %5174 }
0x1034   :  { %v2057_v36 = vsel %vm341_vm3, %v5175_v32, 0.0  ;;  %v5177_v12 = vpop.eup %5176 }
0x1035   :  { %2058 = vadd.xlane.f32.xlu0 %v2057_v36  ;;  %v2054_v39 = vsel %vm341_vm3, %v5177_v12, 0.0 }
0x103e   :  { %5057 = vrot.lane.b32.xlu1 %v5575_v9, %s5279_s11 }
0x104b   :  { %5052 = vrot.lane.b32.xlu0 %v5585_v15, %s5275_s30 }
0x104f   :  { %2155 = vrot.lane.b32.xlu0 %v5566_v4, %s5282_s14 }
0x1062   :  { %2055 = vadd.xlane.f32.xlu1 %v2054_v39 }
0x1073   :  { %2153 = vrot.lane.b32.xlu1 %v5569_v29, %s5282_s14 }
0x10b5   :  { %v1776_v40 = vpop.xlane.xlu0 %1775 }
0x10b6   :  { %5178 = vrcp.f32 %v1776_v40  ;;  %v1773_v41 = vpop.xlane.xlu1 %1772 }
0x10b7   :  { %5180 = vrcp.f32 %v1773_v41 }
0x10ba   :  { %v1660_v9 = vpop.xlane.xlu1 %1659 }
0x10bb   :  { %5182 = vrcp.f32 %v1660_v9 }
0x10be   :  { %v1663_v42 = vpop.xlane.xlu0 %1662  ;;  %v5058_v48 = vpop.permute.xlu1 %5057 }
0x10bf   :  { %5184 = vrcp.f32 %v1663_v42  ;;  %v5060_v52 = vunpack.i.h.bf16 %v5058_v48  ;;  %v5059_v53 = vunpack.i.l.bf16 %v5058_v48  ;;  %v5665_v42 = vld [vmem:[#allocation2 + $0x109] ss:$0 sm:$0xff] }
0x10c0   :  { %v5179_v43 = vpop.eup %5178 }
0x10c1   :  { %v5181_v44 = vpop.eup %5180  ;;  %v1780_v47 = vmul.f32 %v5179_v43, %v5167_v26  ;;  %v4834_v60 = vpack.c.bf16 %v5060_v52, %v5059_v53 }
0x10c2   :  { %v1779_v46 = vmul.f32 %v5181_v44, %v5169_v20  ;;  %v2059_v4 = vpop.xlane.xlu0 %2058 }
0x10c3   :  { %5186 = vrcp.f32 %v2059_v4 }
0x10c4   :  { %4525 = vmatprep.mubr.msk.f32.mxu1 %vm341_vm3, %v1779_v46 }
0x10c5   :  { %v5183_v37 = vpop.eup %5182  ;;  %4526 = vmatmul.mubr.msk.f32.vlgmr.msra.gmra.mrb[12].mxu1 %vm341_vm3, %v1780_v47 }
0x10c6   :  { %4823 = vmatpush3.bf16.msra.mxu1 %v5587_v16  ;;  %v1666_v29 = vmul.f32 %v5183_v37, %v5171_v27  ;;  %v5053_v49 = vpop.permute.xlu0 %5052 }
0x10c7   :  { %v5055_v50 = vunpack.i.h.bf16 %v5053_v49  ;;  %v5054_v51 = vunpack.i.l.bf16 %v5053_v49 }
0x10c8   :  { %4532 = vmatprep.mubr.msk.f32.mxu1 %vm341_vm3, %v1666_v29 }
0x10c9   :  { %v5185_v54 = vpop.eup %5184  ;;  %v4830_v55 = vpack.c.bf16 %v5055_v50, %v5054_v51 }
0x10ca   :  { %v1667_v56 = vmul.f32 %v5185_v54, %v5173_v30  ;;  %v2156_v7 = vpop.permute.xlu0 %2155 }
0x10cb   :  { %4831 = vmatprep.subr.bf16.mxu1 %v4830_v55 }
0x10cd   :  { %4533 = vmatmul.mubr.msk.f32.vlgmr.msra.gmra.mrb[12].mxu1 %vm341_vm3, %v1667_v56  ;;  %v5187_v63 = vpop.eup %5186 }
0x10ce   :  { %4833 = vmatpush3.bf16.msra.mxu1 %v4830_v55  ;;  %v2063_v2 = vmul.f32 %v5187_v63, %v5175_v32 }
0x10cf   :  { %4836 = vmatprep.subr.msk.bf16.mxu1 %vm5393_vm2, %v4834_v60 }
0x10ef   :  { %v2056_v16 = vpop.xlane.xlu1 %2055 }
0x10f0   :  { %5188 = vrcp.f32 %v2056_v16 }
0x10f3   :  { %v2154_v1 = vpop.permute.xlu1 %2153 }
0x10fa   :  { %v5189_v58 = vpop.eup %5188 }
0x10fb   :  { %v2062_v61 = vmul.f32 %v5189_v58, %v5177_v12 }
0x10fd   :  { %4546 = vmatprep.mubr.msk.f32.mxu1 %vm341_vm3, %v2062_v61 }
0x10fe   :  { %4547 = vmatmul.mubr.msk.f32.vlgmr.msra.gmra.mrb[12].mxu1 %vm341_vm3, %v2063_v2 }
0x10ff   :  { %4839 = vmatpush3.bf16.xpose.msk.msra.mxu1 %vm5393_vm2, %v4834_v60  ;;  %4553 = vmatprep.mubr.msk.f32.mxu1 %vm257_vm1, %v2154_v1 }
0x1106   :  { %4554 = vmatmul.mubr.msk.f32.vlgmr.msra.gmra.mrb[14].mxu1 %vm257_vm1, %v2156_v7 }
0x11d9   :  { %v4555_v11 = vpop.f32.mrb[14].mxu1 }
0x11da   :  { %v2241_v14 = vadd.f32 %v4555_v11, %v5420_v62  ;;  %v2235_v17 = vpop.f32.mrb[15].mxu1 }
0x11db   :  { %v2236_v19 = vadd.f32 %v2235_v17, %v5422_v0 }
0x11dc   :  { %v2247_v22 = vsel %vm341_vm3, %v2241_v14, -inf }
0x11dd   :  { %2248 = vmax.xlane.f32.xlu0 %v2247_v22  ;;  %v2244_v10 = vsel %vm341_vm3, %v2236_v19, -inf }
0x11de   :  { %2245 = vmax.xlane.f32.xlu1 %v2244_v10 }
0x126a   :  { %v2249_v18 = vpop.xlane.xlu0 %2248 }
0x126b   :  { %v2251_v26 = vsub.f32 %v2241_v14, %v2249_v18  ;;  %v2246_v20 = vpop.xlane.xlu1 %2245 }
0x126c   :  { %v2250_v21 = vsub.f32 %v2236_v19, %v2246_v20 }
0x126d   :  { %v2254_v23 = vmul.f32 1.442695, %v2251_v26 }
0x126e   :  { %v2252_v24 = vmul.f32 1.442695, %v2250_v21  ;;  %v4852_v21 = vpack.c.bf16 %v1383_v13, %v1382_v6 }
0x126f   :  { %5190 = vpow2.f32 %v2254_v23 }
0x1270   :  { %5192 = vpow2.f32 %v2252_v24 }
0x1279   :  { %v5191_v25 = vpop.eup %5190 }
0x127a   :  { %v5193_v27 = vpop.eup %5192  ;;  %v2259_v28 = vsel %vm341_vm3, %v5191_v25, 0.0 }
0x127b   :  { %2260 = vadd.xlane.f32.xlu1 %v2259_v28  ;;  %v2256_v30 = vsel %vm341_vm3, %v5193_v27, 0.0 }
0x127c   :  { %2257 = vadd.xlane.f32.xlu0 %v2256_v30 }
0x1292   :  { %5062 = vrot.lane.b32.xlu0 %v5585_v15, %s5283_s15 }
0x1308   :  { %v2261_v31 = vpop.xlane.xlu1 %2260 }
0x1309   :  { %5194 = vrcp.f32 %v2261_v31  ;;  %v2258_v32 = vpop.xlane.xlu0 %2257 }
0x130a   :  { %5196 = vrcp.f32 %v2258_v32 }
0x130d   :  { %v5063_v36 = vpop.permute.xlu0 %5062 }
0x130e   :  { %v5065_v33 = vunpack.i.h.bf16 %v5063_v36  ;;  %v5064_v34 = vunpack.i.l.bf16 %v5063_v36  ;;  %v1384_v36 = vld [vmem:[#allocation2 + $0xd8] sm:$0xff] }
0x1310   :  { %v4840_v12 = vpack.c.bf16 %v5065_v33, %v5064_v34  ;;  %v1385_v33 = vld [vmem:[#allocation2 + $0xe0] sm:$0xff] }
0x1311   :  { %v4856_v34 = vpack.c.bf16 %v1385_v33, %v1384_v36 }
0x1312   :  { %4841 = vmatprep.subr.bf16.mxu1 %v4840_v12 }
0x1313   :  { %v5195_v39 = vpop.eup %5194  ;;  %4843 = vmatpush3.bf16.msra.mxu1 %v4840_v12 }
0x1314   :  { %v5197_v40 = vpop.eup %5196  ;;  %v2265_v9 = vmul.f32 %v5195_v39, %v5191_v25  ;;  %v1386_v39 = vld [vmem:[#allocation2 + $0xe8] sm:$0xff] }
0x1315   :  { %v2264_v41 = vmul.f32 %v5197_v40, %v5193_v27  ;;  %v1387_v40 = vld [vmem:[#allocation2 + $0xf0] sm:$0xff] }
0x1317   :  { %4560 = vmatprep.mubr.msk.f32.mxu1 %vm341_vm3, %v2264_v41  ;;  %v4860_v41 = vpack.c.bf16 %v1387_v40, %v1386_v39 }
0x1318   :  { %4561 = vmatmul.mubr.msk.f32.vlgmr.msra.gmra.mrb[12].mxu1 %vm341_vm3, %v2265_v9  ;;  %v1388_v9 = vld [vmem:[#allocation2 + $0xf8] sm:$0xff] }
0x13eb   :  { %v4562_v15 = vpop.f32.mrb[12].mxu1 }
0x13ec   :  { %v2344_v43 = vpop.f32.mrb[13].mxu1  ;;  %v2360_v46 = vadd.f32 %v4562_v15, %v5665_v42 }
0x13ed   :  { %v2359_v44 = vadd.f32 %v5665_v42, %v2344_v43 }
0x13ef   :  { %2363 = vrot.lane.b32.xlu1 %v2359_v44, %s5275_s30 }
0x13f3   :  { %2365 = vrot.lane.b32.xlu1 %v2360_v46, %s5275_s30 }
0x1461   :  { %v2364_v4 = vpop.permute.xlu1 %2363 }
0x1462   :  { %v2369_v47 = vadd.f32 %v2364_v4, %v5553_v59 }
0x1464   :  { %2373 = vrot.lane.b32.xlu0 %v2369_v47, %s5275_s30 }
0x1465   :  { %v2366_v37 = vpop.permute.xlu1 %2365 }
0x1466   :  { %v2370_v48 = vadd.f32 %v2366_v37, %v5551_v57 }
0x1468   :  { %2375 = vrot.lane.b32.xlu1 %v2370_v48, %s5275_s30 }
0x14d6   :  { %v2374_v29 = vpop.permute.xlu0 %2373 }
0x14d7   :  { %v2379_v49 = vsel %vm90_vm0, %v2374_v29, 0.0 }
0x14d8   :  { %2380 = vadd.xlane.f32.xlu0 %v2379_v49 }
0x14da   :  { %v2376_v50 = vpop.permute.xlu1 %2375 }
0x14db   :  { %v2382_v51 = vsel %vm90_vm0, %v2376_v50, 0.0 }
0x14dc   :  { %2383 = vadd.xlane.f32.xlu1 %v2382_v51 }
0x1565   :  { %v2381_v52 = vpop.xlane.xlu0 %2380 }
0x1566   :  { %v2385_v53 = vmul.f32 0.03125, %v2381_v52 }
0x1568   :  { %v2387_v54 = vsub.f32 %v2369_v47, %v2385_v53 }
0x1569   :  { %v2384_v55 = vpop.xlane.xlu1 %2383 }
0x156a   :  { %v2389_v59 = vmul.f32 %v2387_v54, %v2387_v54  ;;  %v2386_v56 = vmul.f32 0.03125, %v2384_v55 }
0x156c   :  { %v2388_v60 = vsub.f32 %v2370_v48, %v2386_v56  ;;  %2393 = vrot.lane.b32.xlu0 %v2389_v59, %s5275_s30 }
0x156e   :  { %v2390_v57 = vmul.f32 %v2388_v60, %v2388_v60 }
0x1570   :  { %2395 = vrot.lane.b32.xlu1 %v2390_v57, %s5275_s30 }
0x15de   :  { %v2394_v16 = vpop.permute.xlu0 %2393 }
0x15df   :  { %v2399_v63 = vsel %vm90_vm0, %v2394_v16, 0.0 }
0x15e0   :  { %2400 = vadd.xlane.f32.xlu0 %v2399_v63 }
0x15e2   :  { %v2396_v58 = vpop.permute.xlu1 %2395 }
0x15e3   :  { %v2402_v61 = vsel %vm90_vm0, %v2396_v58, 0.0 }
0x15e4   :  { %2403 = vadd.xlane.f32.xlu1 %v2402_v61 }
0x15f5   :  { %5067 = vrot.lane.b32.xlu1 %v5066_v8, %s5275_s30 }
0x15f6   :  { %2416 = vrot.lane.b32.xlu0 %v5665_v42, %s5276_s8 }
0x15fa   :  { %5072 = vrot.lane.b32.xlu0 %v5071_v38, %s5275_s30 }
0x166d   :  { %v2401_v2 = vpop.xlane.xlu0 %2400 }
0x166e   :  { %v2405_v1 = vmul.f32 0.03125, %v2401_v2 }
0x1670   :  { %v2407_v7 = vadd.f32 1e-05, %v2405_v1 }
0x1671   :  { %v2404_v11 = vpop.xlane.xlu1 %2403  ;;  %v5691_v14 = vpop.permute.xlu0 %2416 }
0x1672   :  { %5198 = vrsqrt.f32 %v2407_v7  ;;  %v2406_v17 = vmul.f32 0.03125, %v2404_v11 }
0x1674   :  { %v2408_v19 = vadd.f32 1e-05, %v2406_v17 }
0x1675   :  { %v5068_v22 = vpop.permute.xlu1 %5067  ;;  %v5073_v35 = vpop.permute.xlu0 %5072 }
0x1676   :  { %5200 = vrsqrt.f32 %v2408_v19  ;;  %v5070_v5 = vunpack.i.h.bf16 %v5068_v22  ;;  %v5069_v8 = vunpack.i.l.bf16 %v5068_v22  ;;  %v5075_v10 = vunpack.i.h.bf16 %v5073_v35  ;;  %v4156_v22 = vld [vmem:[#allocation2 + $0x10a] ss:$0 sm:$0xff] }
0x1677   :  { %v5074_v18 = vunpack.i.l.bf16 %v5073_v35  ;;  %v5719_v35 = vld [vmem:[#allocation2 + $0x110] sm:$0xff] }
0x1678   :  { %v4844_v26 = vpack.c.bf16 %v5070_v5, %v5069_v8  ;;  %v5721_v5 = vld [vmem:[#allocation2 + $0x118] sm:$0xff]  ;;  %v5723_v8 = vld [vmem:[#allocation2 + $0x120] sm:$0xff] }
0x1679   :  { %v4848_v20 = vpack.c.bf16 %v5075_v10, %v5074_v18  ;;  %v5111_v10 = vpack.i.bf16 %v5721_v5, %v5719_v35  ;;  %v4868_v18 = vpack.c.bf16 %v5721_v5, %v5719_v35 }
0x167a   :  { %4845 = vmatprep.subr.bf16.mxu0 %v4844_v26 }
0x167b   :  { %4847 = vmatpush3.bf16.msra.mxu0 %v4844_v26  ;;  %v5729_v26 = vld [vmem:[#allocation2 + $0x128] sm:$0xff]  ;;  %4869 = vmatprep.subr.bf16.mxu1 %v4868_v18 }
0x167c   :  { %v5199_v38 = vpop.eup %5198  ;;  %4849 = vmatprep.subr.bf16.mxu0 %v4848_v20  ;;  %v4872_v6 = vpack.c.bf16 %v5729_v26, %v5723_v8  ;;  %4871 = vmatpush3.bf16.msra.mxu1 %v4868_v18 }
0x167d   :  { %v2411_v23 = vmul.f32 %v5199_v38, %v2387_v54 }
0x167e   :  { %4873 = vmatprep.subr.bf16.mxu1 %v4872_v6 }
0x167f   :  { %v2413_v24 = vmul.f32 %v5665_v42, %v2411_v23  ;;  %4851 = vmatpush3.bf16.msra.mxu0 %v4848_v20  ;;  %v5116_v20 = vpack.i.bf16 %v5729_v26, %v5723_v8  ;;  %v2684_v26 = vld [vmem:[#allocation2 + $0x150] sm:$0xff] }
0x1680   :  { %v5201_v25 = vpop.eup %5200  ;;  %4853 = vmatprep.subr.bf16.mxu0 %v4852_v21  ;;  %4875 = vmatpush3.bf16.msra.mxu1 %v4872_v6 }
0x1681   :  { %v2412_v27 = vmul.f32 %v5201_v25, %v2388_v60  ;;  %v2419_v28 = vadd.f32 %v5691_v14, %v2413_v24 }
0x1683   :  { %v2414_v30 = vmul.f32 %v5665_v42, %v2412_v27  ;;  %2423 = vrot.lane.b32.xlu1 %v2419_v28, %s5275_s30  ;;  %v1389_v42 = vld [vmem:[#allocation2 + $0x100] sm:$0xff]  ;;  %v2680_v27 = vld [vmem:[#allocation2 + $0x130] sm:$0xff] }
0x1685   :  { %v2420_v31 = vadd.f32 %v5691_v14, %v2414_v30 }
0x1687   :  { %2425 = vrot.lane.b32.xlu0 %v2420_v31, %s5275_s30  ;;  %2444 = vrot.lane.b32.xlu1 %v5563_v3, %s5275_s30  ;;  %v4864_v3 = vpack.c.bf16 %v1389_v42, %v1388_v9  ;;  %v2682_v42 = vld [vmem:[#allocation2 + $0x140] sm:$0xff] }
0x16f5   :  { %v2424_v32 = vpop.permute.xlu1 %2423 }
0x16f6   :  { %4571 = vmatprep.mubr.msk.f32.mxu0 %vm90_vm0, %v2424_v32 }
0x16f9   :  { %v2426_v12 = vpop.permute.xlu0 %2425  ;;  %v2445_v15 = vpop.permute.xlu1 %2444 }
0x16fa   :  { %4572 = vmatmul.mubr.msk.f32.vlgmr.msra.gmra.mrb[16].mxu0 %vm90_vm0, %v2426_v12 }
0x16fb   :  { %4855 = vmatpush3.bf16.msra.mxu0 %v4852_v21 }
0x16fc   :  { %4857 = vmatprep.subr.bf16.mxu0 %v4856_v34 }
0x16ff   :  { %4859 = vmatpush3.bf16.msra.mxu0 %v4856_v34 }
0x1700   :  { %4861 = vmatprep.subr.bf16.mxu0 %v4860_v41 }
0x1703   :  { %4863 = vmatpush3.bf16.msra.mxu0 %v4860_v41 }
0x1704   :  { %4865 = vmatprep.subr.bf16.mxu0 %v4864_v3 }
0x1707   :  { %4867 = vmatpush3.bf16.msra.mxu0 %v4864_v3  ;;  %v2683_v3 = vld [vmem:[#allocation2 + $0x148] sm:$0xff] }
0x17cd   :  { %v4573_v43 = vpop.f32.mrb[16].mxu0 }
0x17ce   :  { %v2523_v44 = vadd.f32 %v4573_v43, %v2445_v15  ;;  %v2517_v46 = vpop.f32.mrb[17].mxu0  ;;  %v4880_v43 = vpack.c.bf16 %v2683_v3, %v2682_v42 }
0x17cf   :  { %v2518_v4 = vadd.f32 %v2517_v46, %v2445_v15  ;;  %v5747_v46 = vld [vmem:[#allocation2 + $0x190] ss:$0 sm:$0xff] }
0x17d0   :  { %v2527_v37 = vmax.f32 %v2523_v44, 0.0 }
0x17d1   :  { %v2526_v47 = vmax.f32 %v2518_v4, 0.0 }
0x17d3   :  { %4590 = vmatprep.mubr.msk.f32.mxu0 %vm1225_vm4, %v2526_v47 }
0x17d4   :  { %4591 = vmatmul.mubr.msk.f32.vlgmr.msra.gmra.mrb[18].mxu0 %vm1225_vm4, %v2527_v37 }
0x18a7   :  { %v4592_v48 = vpop.f32.mrb[18].mxu0 }
0x18a8   :  { %v2606_v29 = vadd.f32 %v4592_v48, %v5691_v14  ;;  %v2600_v49 = vpop.f32.mrb[19].mxu0 }
0x18a9   :  { %v2601_v50 = vadd.f32 %v2600_v49, %v5691_v14 }
0x18aa   :  { %2613 = vrot.lane.b32.xlu1 %v2606_v29, %s5275_s30 }
0x18ab   :  { %2611 = vrot.lane.b32.xlu0 %v2601_v50, %s5275_s30 }
0x191c   :  { %v2614_v51 = vpop.permute.xlu1 %2613 }
0x191d   :  { %v2618_v52 = vadd.f32 %v2614_v51, %v2420_v31  ;;  %v2612_v53 = vpop.permute.xlu0 %2611 }
0x191e   :  { %v2617_v54 = vadd.f32 %v2612_v53, %v2419_v28  ;;  %v2681_v28 = vld [vmem:[#allocation2 + $0x138] sm:$0xff] }
0x191f   :  { %2623 = vrot.lane.b32.xlu1 %v2618_v52, %s5275_s30  ;;  %v4876_v30 = vpack.c.bf16 %v2681_v28, %v2680_v27 }
0x1920   :  { %2621 = vrot.lane.b32.xlu0 %v2617_v54, %s5275_s30 }
0x1921   :  { %4877 = vmatprep.subr.bf16.mxu1 %v4876_v30 }
0x1991   :  { %v2624_v55 = vpop.permute.xlu1 %2623 }
0x1992   :  { %v2630_v59 = vsel %vm90_vm0, %v2624_v55, 0.0  ;;  %v2622_v56 = vpop.permute.xlu0 %2621 }
0x1993   :  { %v2627_v60 = vsel %vm90_vm0, %v2622_v56, 0.0  ;;  %2631 = vadd.xlane.f32.xlu1 %v2630_v59 }
0x1994   :  { %2628 = vadd.xlane.f32.xlu0 %v2627_v60 }
0x1a20   :  { %v2632_v57 = vpop.xlane.xlu1 %2631 }
0x1a21   :  { %v2634_v16 = vmul.f32 0.03125, %v2632_v57  ;;  %v2629_v63 = vpop.xlane.xlu0 %2628 }
0x1a22   :  { %v2633_v58 = vmul.f32 0.03125, %v2629_v63 }
0x1a23   :  { %v2636_v61 = vsub.f32 %v2618_v52, %v2634_v16 }
0x1a24   :  { %v2635_v2 = vsub.f32 %v2617_v54, %v2633_v58 }
0x1a25   :  { %v2638_v1 = vmul.f32 %v2636_v61, %v2636_v61 }
0x1a26   :  { %v2637_v7 = vmul.f32 %v2635_v2, %v2635_v2 }
0x1a27   :  { %2643 = vrot.lane.b32.xlu1 %v2638_v1, %s5275_s30 }
0x1a28   :  { %2641 = vrot.lane.b32.xlu0 %v2637_v7, %s5275_s30 }
0x1a99   :  { %v2644_v11 = vpop.permute.xlu1 %2643 }
0x1a9a   :  { %v2650_v14 = vsel %vm90_vm0, %v2644_v11, 0.0  ;;  %v2642_v17 = vpop.permute.xlu0 %2641 }
0x1a9b   :  { %v2647_v19 = vsel %vm90_vm0, %v2642_v17, 0.0  ;;  %2651 = vadd.xlane.f32.xlu1 %v2650_v14 }
0x1a9c   :  { %2648 = vadd.xlane.f32.xlu0 %v2647_v19 }
0x1aac   :  { %2671 = vrot.lane.b32.xlu1 %v4156_v22, %s5283_s15 }
0x1ab2   :  { %2666 = vrot.lane.b32.xlu0 %v4156_v22, %s5275_s30 }
0x1b28   :  { %v2652_v13 = vpop.xlane.xlu1 %2651 }
0x1b29   :  { %v2654_v38 = vmul.f32 0.03125, %v2652_v13  ;;  %v2649_v21 = vpop.xlane.xlu0 %2648 }
0x1b2a   :  { %v2653_v23 = vmul.f32 0.03125, %v2649_v21 }
0x1b2b   :  { %v2656_v24 = vadd.f32 1e-05, %v2654_v38 }
0x1b2c   :  { %v2655_v25 = vadd.f32 1e-05, %v2653_v23  ;;  %v2672_v12 = vpop.permute.xlu1 %2671 }
0x1b2d   :  { %5202 = vrsqrt.f32 %v2656_v24  ;;  %v2667_v32 = vpop.permute.xlu0 %2666 }
0x1b2e   :  { %5204 = vrsqrt.f32 %v2655_v25 }
0x1b37   :  { %v5203_v31 = vpop.eup %5202 }
0x1b38   :  { %v5205_v36 = vpop.eup %5204  ;;  %v2660_v33 = vmul.f32 %v5203_v31, %v2636_v61 }
0x1b39   :  { %v2659_v34 = vmul.f32 %v5205_v36, %v2635_v2 }
0x1b3a   :  { %v2670_v39 = vmul.f32 %v2667_v32, %v2660_v33 }
0x1b3b   :  { %v2669_v40 = vmul.f32 %v2667_v32, %v2659_v34 }
0x1b3c   :  { %v5735_v41 = vadd.f32 %v2672_v12, %v2670_v39 }
0x1b3d   :  { %v5737_v9 = vadd.f32 %v2672_v12, %v2669_v40 }
0x1b3e   :  { %2703 = vrot.lane.b32.xlu1 %v5735_v41, %s5275_s30 }
0x1b3f   :  { %2701 = vrot.lane.b32.xlu0 %v5737_v9, %s5275_s30 }
0x1bb0   :  { %v2704_v44 = vpop.permute.xlu1 %2703 }
0x1bb1   :  { %v2702_v15 = vpop.permute.xlu0 %2701 }
0x1bb2   :  { %4601 = vmatprep.mubr.msk.f32.mxu1 %vm90_vm0, %v2702_v15 }
0x1bb3   :  { %4602 = vmatmul.mubr.msk.f32.vlgmr.msra.gmra.mrb[16].mxu1 %vm90_vm0, %v2704_v44 }
0x1bb4   :  { %4879 = vmatpush3.bf16.msra.mxu1 %v4876_v30  ;;  %4612 = vmatprep.mubr.msk.f32.mxu1 %vm90_vm0, %v2702_v15 }
0x1bb5   :  { %4881 = vmatprep.subr.bf16.mxu1 %v4880_v43 }
0x1bb8   :  { %4883 = vmatpush3.bf16.msra.mxu1 %v4880_v43 }
0x1bbb   :  { %4613 = vmatmul.mubr.msk.f32.vlgmr.msra.gmra.mrb[18].mxu1 %vm90_vm0, %v2704_v44 }
0x1c86   :  { %v4603_v4 = vpop.f32.mrb[16].mxu1 }
0x1c87   :  { %v2781_v47 = vadd.f32 %v4603_v4, %v5747_v46  ;;  %v2775_v37 = vpop.f32.mrb[17].mxu1 }
0x1c88   :  { %v2776_v48 = vadd.f32 %v5747_v46, %v2775_v37 }
0x1c8a   :  { %4619 = vmatprep.mubr.msk.f32.mxu0 %vm257_vm1, %v2776_v48  ;;  %v5081_v29 = vpack.i.bf16 %v2781_v47, %v2776_v48 }
0x1c8c   :  { %5082 = vrot.lane.b32.xlu1 %v5081_v29, %s5276_s8  ;;  %5077 = vrot.lane.b32.xlu0 %v5081_v29, %s5277_s9 }
0x1c8e   :  { %v4614_v49 = vpop.f32.mrb[18].mxu1 }
0x1c8f   :  { %v2850_v50 = vpop.f32.mrb[19].mxu1 }
0x1c90   :  { %v5754_v51 = vpack.i.bf16 %v4614_v49, %v2850_v50  ;;  %2972 = vrot.lane.b32.xlu1 %v2781_v47, %s5278_s10  ;;  %2970 = vrot.lane.b32.xlu0 %v2776_v48, %s5278_s10  ;;  %v5758_v52 = vpack.c.bf16 %v4614_v49, %v2850_v50 }
0x1c94   :  { %5092 = vrot.lane.b32.xlu1 %v5081_v29, %s5279_s11  ;;  %5087 = vrot.lane.b32.xlu0 %v5081_v29, %s5280_s12 }
0x1c98   :  { %3255 = vrot.lane.b32.xlu1 %v2781_v47, %s5281_s13  ;;  %3253 = vrot.lane.b32.xlu0 %v2776_v48, %s5281_s13 }
0x1c9c   :  { %3457 = vrot.lane.b32.xlu1 %v2781_v47, %s5282_s14  ;;  %3455 = vrot.lane.b32.xlu0 %v2776_v48, %s5282_s14 }
0x1cfe   :  { %v5083_v53 = vpop.permute.xlu1 %5082  ;;  %v5078_v54 = vpop.permute.xlu0 %5077 }
0x1cff   :  { %v5085_v55 = vunpack.i.h.bf16 %v5083_v53  ;;  %v5084_v59 = vunpack.i.l.bf16 %v5083_v53  ;;  %v5080_v56 = vunpack.i.h.bf16 %v5078_v54  ;;  %v5079_v60 = vunpack.i.l.bf16 %v5078_v54 }
0x1d01   :  { %v4884_v57 = vpack.c.bf16 %v5085_v55, %v5084_v59  ;;  %v4890_v16 = vpack.c.bf16 %v5080_v56, %v5079_v60 }
0x1d02   :  { %v2973_v63 = vpop.permute.xlu1 %2972  ;;  %v2971_v58 = vpop.permute.xlu0 %2970 }
0x1d03   :  { %4886 = vmatprep.subr.msk.bf16.mxu0 %vm5393_vm2, %v4884_v57  ;;  %4892 = vmatprep.subr.msk.bf16.mxu1 %vm5393_vm2, %v4890_v16 }
0x1d04   :  { %4626 = vmatprep.mubr.msk.f32.mxu1 %vm257_vm1, %v2971_v58  ;;  %4889 = vmatpush3.bf16.xpose.msk.msra.mxu0 %vm5393_vm2, %v4884_v57 }
0x1d05   :  { %4895 = vmatpush3.bf16.xpose.msk.msra.mxu1 %vm5393_vm2, %v4890_v16 }
0x1d06   :  { %v5093_v61 = vpop.permute.xlu1 %5092  ;;  %v5088_v2 = vpop.permute.xlu0 %5087 }
0x1d07   :  { %v5090_v1 = vunpack.i.h.bf16 %v5088_v2  ;;  %v5089_v7 = vunpack.i.l.bf16 %v5088_v2  ;;  %v5095_v11 = vunpack.i.h.bf16 %v5093_v61  ;;  %v5094_v14 = vunpack.i.l.bf16 %v5093_v61 }
0x1d09   :  { %v4904_v17 = vpack.c.bf16 %v5090_v1, %v5089_v7  ;;  %v4914_v22 = vpack.c.bf16 %v5095_v11, %v5094_v14 }
0x1d0a   :  { %v3254_v19 = vpop.permute.xlu0 %3253  ;;  %v3256_v18 = vpop.permute.xlu1 %3255 }
0x1d0b   :  { %4620 = vmatmul.mubr.msk.f32.vlgmr.msra.gmra.mrb[20].mxu0 %vm257_vm1, %v2781_v47  ;;  %4906 = vmatprep.subr.msk.bf16.mxu1 %vm5393_vm2, %v4904_v17 }
0x1d0c   :  { %4627 = vmatmul.mubr.msk.f32.vlgmr.msra.gmra.mrb[20].mxu1 %vm257_vm1, %v2973_v63 }
0x1d0d   :  { %4909 = vmatpush3.bf16.xpose.msk.msra.mxu1 %vm5393_vm2, %v4904_v17  ;;  %4647 = vmatprep.mubr.msk.f32.mxu1 %vm257_vm1, %v3254_v19 }
0x1d0e   :  { %4916 = vmatprep.subr.msk.bf16.mxu1 %vm5393_vm2, %v4914_v22  ;;  %v3456_v6 = vpop.permute.xlu0 %3455  ;;  %v3458_v13 = vpop.permute.xlu1 %3457 }
0x1d14   :  { %4648 = vmatmul.mubr.msk.f32.vlgmr.msra.gmra.mrb[22].mxu1 %vm257_vm1, %v3256_v18 }
0x1d15   :  { %4919 = vmatpush3.bf16.xpose.msk.msra.mxu1 %vm5393_vm2, %v4914_v22  ;;  %4661 = vmatprep.mubr.msk.f32.mxu1 %vm257_vm1, %v3456_v6 }
0x1d1c   :  { %4662 = vmatmul.mubr.msk.f32.vlgmr.msra.gmra.mrb[24].mxu1 %vm257_vm1, %v3458_v13 }
0x1dde   :  { %v4621_v38 = vpop.f32.mrb[20].mxu0 }
0x1ddf   :  { %v4628_v21 = vpop.f32.mrb[20].mxu1  ;;  %v2939_v23 = vpop.f32.mrb[21].mxu0  ;;  %v2945_v31 = vadd.f32 %v4621_v38, %v5420_v62 }
0x1de0   :  { %v3058_v24 = vadd.f32 %v4628_v21, %v5420_v62  ;;  %v3052_v25 = vpop.f32.mrb[21].mxu1  ;;  %v5793_v30 = vadd.f32 %v2939_v23, %v5422_v0 }
0x1de1   :  { %v3053_v27 = vadd.f32 %v3052_v25, %v5422_v0  ;;  %v2951_v40 = vsel %vm341_vm3, %v2945_v31, -inf }
0x1de2   :  { %v3064_v28 = vsel %vm341_vm3, %v3058_v24, -inf  ;;  %v2948_v36 = vsel %vm341_vm3, %v5793_v30, -inf }
0x1de3   :  { %3065 = vmax.xlane.f32.xlu1 %v3064_v28  ;;  %v3061_v45 = vsel %vm341_vm3, %v3053_v27, -inf }
0x1de4   :  { %3062 = vmax.xlane.f32.xlu0 %v3061_v45 }
0x1de7   :  { %v4649_v32 = vpop.f32.mrb[22].mxu1 }
0x1de8   :  { %v3335_v33 = vpop.f32.mrb[23].mxu1  ;;  %2949 = vmax.xlane.f32.xlu0 %v2948_v36  ;;  %v3341_v12 = vadd.f32 %v4649_v32, %v5420_v62 }
0x1de9   :  { %v5800_v34 = vadd.f32 %v3335_v33, %v5422_v0 }
0x1dea   :  { %v3347_v3 = vsel %vm341_vm3, %v3341_v12, -inf }
0x1deb   :  { %v3344_v39 = vsel %vm341_vm3, %v5800_v34, -inf }
0x1dec   :  { %3345 = vmax.xlane.f32.xlu1 %v3344_v39  ;;  %2952 = vmax.xlane.f32.xlu0 %v2951_v40 }
0x1def   :  { %v4663_v42 = vpop.f32.mrb[24].mxu1 }
0x1df0   :  { %v3543_v15 = vadd.f32 %v4663_v42, %v5420_v62  ;;  %v3537_v43 = vpop.f32.mrb[25].mxu1  ;;  %3348 = vmax.xlane.f32.xlu0 %v3347_v3 }
0x1df1   :  { %v3538_v44 = vadd.f32 %v3537_v43, %v5422_v0 }
0x1df2   :  { %v3549_v4 = vsel %vm341_vm3, %v3543_v15, -inf }
0x1df3   :  { %v3546_v47 = vsel %vm341_vm3, %v3538_v44, -inf }
0x1df4   :  { %3547 = vmax.xlane.f32.xlu1 %v3546_v47  ;;  %3550 = vmax.xlane.f32.xlu0 %v3549_v4 }
0x1e70   :  { %v3066_v37 = vpop.xlane.xlu1 %3065 }
0x1e71   :  { %v3068_v48 = vsub.f32 %v3058_v24, %v3066_v37  ;;  %v3063_v29 = vpop.xlane.xlu0 %3062 }
0x1e72   :  { %v3067_v49 = vsub.f32 %v3053_v27, %v3063_v29 }
0x1e73   :  { %v3071_v50 = vmul.f32 1.442695, %v3068_v48 }
0x1e74   :  { %v3069_v53 = vmul.f32 1.442695, %v3067_v49 }
0x1e75   :  { %5206 = vpow2.f32 %v3071_v50  ;;  %v2950_v54 = vpop.xlane.xlu0 %2949 }
0x1e76   :  { %5208 = vpow2.f32 %v3069_v53  ;;  %v2954_v24 = vsub.f32 %v5793_v30, %v2950_v54 }
0x1e78   :  { %v2956_v25 = vmul.f32 1.442695, %v2954_v24 }
0x1e79   :  { %v2953_v62 = vpop.xlane.xlu0 %2952  ;;  %v3346_v56 = vpop.xlane.xlu1 %3345 }
0x1e7a   :  { %v2955_v55 = vsub.f32 %v2945_v31, %v2953_v62  ;;  %v3350_v27 = vsub.f32 %v5800_v34, %v3346_v56 }
0x1e7c   :  { %v2958_v59 = vmul.f32 1.442695, %v2955_v55  ;;  %v3352_v28 = vmul.f32 1.442695, %v3350_v27 }
0x1e7d   :  { %v3349_v0 = vpop.xlane.xlu0 %3348 }
0x1e7e   :  { %v3351_v60 = vsub.f32 %v3341_v12, %v3349_v0  ;;  %5210 = vpow2.f32 %v2958_v59 }
0x1e7f   :  { %v5207_v57 = vpop.eup %5206 }
0x1e80   :  { %v5209_v16 = vpop.eup %5208  ;;  %v3354_v63 = vmul.f32 1.442695, %v3351_v60  ;;  %v3076_v58 = vsel %vm341_vm3, %v5207_v57, 0.0 }
0x1e81   :  { %v3548_v61 = vpop.xlane.xlu1 %3547  ;;  %3077 = vadd.xlane.f32.xlu0 %v3076_v58  ;;  %v3551_v2 = vpop.xlane.xlu0 %3550  ;;  %v3073_v1 = vsel %vm341_vm3, %v5209_v16, 0.0 }
0x1e82   :  { %5212 = vpow2.f32 %v3354_v63  ;;  %v3552_v7 = vsub.f32 %v3538_v44, %v3548_v61  ;;  %v3553_v11 = vsub.f32 %v3543_v15, %v3551_v2  ;;  %3074 = vadd.xlane.f32.xlu1 %v3073_v1 }
0x1e84   :  { %v3556_v14 = vmul.f32 1.442695, %v3553_v11  ;;  %v3554_v17 = vmul.f32 1.442695, %v3552_v7  ;;  %v5853_v11 = vld [vmem:[#allocation2 + $0x191] ss:$0 sm:$0xff] }
0x1e86   :  { %5214 = vpow2.f32 %v3556_v14 }
0x1e87   :  { %5216 = vpow2.f32 %v3554_v17 }
0x1e88   :  { %v5813_v19 = vpop.eup %5210  ;;  %5218 = vpow2.f32 %v2956_v25 }
0x1e89   :  { %v2963_v22 = vsel %vm341_vm3, %v5813_v19, 0.0  ;;  %5220 = vpow2.f32 %v3352_v28 }
0x1e8a   :  { %2964 = vadd.xlane.f32.xlu0 %v2963_v22 }
0x1e8c   :  { %v5817_v18 = vpop.eup %5212 }
0x1e8d   :  { %v3359_v6 = vsel %vm341_vm3, %v5817_v18, 0.0 }
0x1e8e   :  { %3360 = vadd.xlane.f32.xlu0 %v3359_v6 }
0x1e90   :  { %v5821_v13 = vpop.eup %5214 }
0x1e91   :  { %v3561_v38 = vsel %vm341_vm3, %v5821_v13, 0.0  ;;  %v5825_v21 = vpop.eup %5216 }
0x1e92   :  { %3562 = vadd.xlane.f32.xlu0 %v3561_v38  ;;  %v3558_v23 = vsel %vm341_vm3, %v5825_v21, 0.0  ;;  %v5219_v45 = vpop.eup %5218 }
0x1e93   :  { %5097 = vrot.lane.b32.xlu1 %v5754_v51, %s5276_s8  ;;  %v2960_v31 = vsel %vm341_vm3, %v5219_v45, 0.0  ;;  %v5221_v32 = vpop.eup %5220 }
0x1e94   :  { %v3356_v36 = vsel %vm341_vm3, %v5221_v32, 0.0 }
0x1e96   :  { %3559 = vadd.xlane.f32.xlu0 %v3558_v23 }
0x1eac   :  { %5102 = vrot.lane.b32.xlu0 %v5754_v51, %s5275_s30 }
0x1eb7   :  { %2961 = vadd.xlane.f32.xlu1 %v2960_v31 }
0x1ebb   :  { %3357 = vadd.xlane.f32.xlu1 %v3356_v36 }
0x1ecc   :  { %5107 = vrot.lane.b32.xlu1 %v5754_v51, %s5283_s15 }
0x1f0e   :  { %v3078_v30 = vpop.xlane.xlu0 %3077 }
0x1f0f   :  { %5222 = vrcp.f32 %v3078_v30  ;;  %v3075_v33 = vpop.xlane.xlu1 %3074 }
0x1f10   :  { %5224 = vrcp.f32 %v3075_v33 }
0x1f13   :  { %v5098_v34 = vpop.permute.xlu1 %5097 }
0x1f14   :  { %v5100_v12 = vunpack.i.h.bf16 %v5098_v34  ;;  %v5099_v39 = vunpack.i.l.bf16 %v5098_v34 }
0x1f16   :  { %v4896_v40 = vpack.c.bf16 %v5100_v12, %v5099_v39 }
0x1f17   :  { %v2965_v42 = vpop.xlane.xlu0 %2964 }
0x1f18   :  { %4897 = vmatprep.subr.bf16.mxu0 %v4896_v40  ;;  %5226 = vrcp.f32 %v2965_v42 }
0x1f19   :  { %v5223_v3 = vpop.eup %5222  ;;  %4899 = vmatpush3.bf16.msra.mxu0 %v4896_v40 }
0x1f1a   :  { %v5225_v15 = vpop.eup %5224  ;;  %4901 = vmatprep.subr.bf16.mxu0 %v5758_v52  ;;  %v3082_v44 = vmul.f32 %v5223_v3, %v5207_v57 }
0x1f1b   :  { %v3081_v43 = vmul.f32 %v5225_v15, %v5209_v16  ;;  %v3361_v4 = vpop.xlane.xlu0 %3360 }
0x1f1d   :  { %4633 = vmatprep.mubr.msk.f32.mxu0 %vm341_vm3, %v3081_v43 }
0x1f1e   :  { %4634 = vmatmul.mubr.msk.f32.vlgmr.msra.gmra.mrb[22].mxu0 %vm341_vm3, %v3082_v44 }
0x1f1f   :  { %4903 = vmatpush3.bf16.msra.mxu0 %v5758_v52  ;;  %v3563_v51 = vpop.xlane.xlu0 %3562 }
0x1f22   :  { %v5227_v62 = vpop.eup %5226 }
0x1f23   :  { %v3560_v47 = vpop.xlane.xlu0 %3559  ;;  %v2969_v0 = vmul.f32 %v5227_v62, %v5813_v19 }
0x1f27   :  { %v5103_v37 = vpop.permute.xlu0 %5102 }
0x1f28   :  { %v5105_v48 = vunpack.i.h.bf16 %v5103_v37  ;;  %v5104_v29 = vunpack.i.l.bf16 %v5103_v37  ;;  %v2686_v37 = vld [vmem:[#allocation2 + $0x160] sm:$0xff] }
0x1f2a   :  { %v4910_v49 = vpack.c.bf16 %v5105_v48, %v5104_v29  ;;  %v2687_v29 = vld [vmem:[#allocation2 + $0x168] sm:$0xff] }
0x1f2c   :  { %4911 = vmatprep.subr.bf16.mxu0 %v4910_v49 }
0x1f44   :  { %v2962_v50 = vpop.xlane.xlu1 %2961 }
0x1f45   :  { %5228 = vrcp.f32 %v2962_v50  ;;  %v4936_v50 = vpack.c.bf16 %v2687_v29, %v2686_v37 }
0x1f48   :  { %v3358_v53 = vpop.xlane.xlu1 %3357 }
0x1f49   :  { %5230 = vrcp.f32 %v3358_v53  ;;  %v2688_v53 = vld [vmem:[#allocation2 + $0x170] sm:$0xff] }
0x1f4a   :  { %5232 = vrcp.f32 %v3361_v4 }
0x1f4b   :  { %5234 = vrcp.f32 %v3560_v47 }
0x1f4c   :  { %v5108_v54 = vpop.permute.xlu1 %5107  ;;  %5236 = vrcp.f32 %v3563_v51 }
0x1f4d   :  { %v5110_v59 = vunpack.i.h.bf16 %v5108_v54  ;;  %v5109_v56 = vunpack.i.l.bf16 %v5108_v54  ;;  %v2689_v54 = vld [vmem:[#allocation2 + $0x178] sm:$0xff] }
0x1f4f   :  { %v5229_v55 = vpop.eup %5228  ;;  %v4920_v57 = vpack.c.bf16 %v5110_v59, %v5109_v56  ;;  %v4940_v56 = vpack.c.bf16 %v2689_v54, %v2688_v53 }
0x1f50   :  { %v2968_v52 = vmul.f32 %v5229_v55, %v5219_v45 }
0x1f52   :  { %4640 = vmatprep.mubr.msk.f32.mxu0 %vm341_vm3, %v2968_v52 }
0x1f53   :  { %v5231_v60 = vpop.eup %5230  ;;  %4641 = vmatmul.mubr.msk.f32.vlgmr.msra.gmra.mrb[22].mxu0 %vm341_vm3, %v2969_v0 }
0x1f54   :  { %4913 = vmatpush3.bf16.msra.mxu0 %v4910_v49  ;;  %v3364_v16 = vmul.f32 %v5231_v60, %v5221_v32  ;;  %v5233_v63 = vpop.eup %5232 }
0x1f55   :  { %4921 = vmatprep.subr.bf16.mxu0 %v4920_v57  ;;  %v5235_v58 = vpop.eup %5234  ;;  %v3365_v61 = vmul.f32 %v5233_v63, %v5817_v18 }
0x1f56   :  { %4654 = vmatprep.mubr.msk.f32.mxu0 %vm341_vm3, %v3364_v16  ;;  %v3566_v2 = vmul.f32 %v5235_v58, %v5825_v21  ;;  %v5237_v1 = vpop.eup %5236 }
0x1f57   :  { %v3567_v7 = vmul.f32 %v5237_v1, %v5821_v13 }
0x1f5b   :  { %4655 = vmatmul.mubr.msk.f32.vlgmr.msra.gmra.mrb[22].mxu0 %vm341_vm3, %v3365_v61  ;;  %v2690_v61 = vld [vmem:[#allocation2 + $0x180] sm:$0xff] }
0x1f5c   :  { %4923 = vmatpush3.bf16.msra.mxu0 %v4920_v57  ;;  %4668 = vmatprep.mubr.msk.f32.mxu0 %vm341_vm3, %v3566_v2  ;;  %v2691_v2 = vld [vmem:[#allocation2 + $0x188] sm:$0xff] }
0x1f5d   :  { %v4944_v1 = vpack.c.bf16 %v2691_v2, %v2690_v61 }
0x1f63   :  { %4669 = vmatmul.mubr.msk.f32.vlgmr.msra.gmra.mrb[22].mxu0 %vm341_vm3, %v3567_v7 }
0x2036   :  { %v4670_v14 = vpop.f32.mrb[22].mxu0 }
0x2037   :  { %v3646_v17 = vpop.f32.mrb[23].mxu0  ;;  %v3662_v22 = vadd.f32 %v4670_v14, %v5853_v11 }
0x2038   :  { %v3661_v19 = vadd.f32 %v5853_v11, %v3646_v17 }
0x203a   :  { %3665 = vrot.lane.b32.xlu1 %v3661_v19, %s5275_s30 }
0x203e   :  { %3667 = vrot.lane.b32.xlu1 %v3662_v22, %s5275_s30 }
0x20ac   :  { %v3666_v18 = vpop.permute.xlu1 %3665 }
0x20ad   :  { %v3671_v6 = vadd.f32 %v3666_v18, %v5737_v9 }
0x20af   :  { %3675 = vrot.lane.b32.xlu1 %v3671_v6, %s5275_s30 }
0x20b0   :  { %v3668_v13 = vpop.permute.xlu1 %3667 }
0x20b1   :  { %v3672_v38 = vadd.f32 %v3668_v13, %v5735_v41 }
0x20b3   :  { %3677 = vrot.lane.b32.xlu0 %v3672_v38, %s5275_s30 }
0x2121   :  { %v3676_v21 = vpop.permute.xlu1 %3675 }
0x2122   :  { %v3681_v23 = vsel %vm90_vm0, %v3676_v21, 0.0 }
0x2123   :  { %3682 = vadd.xlane.f32.xlu1 %v3681_v23 }
0x2125   :  { %v3678_v24 = vpop.permute.xlu0 %3677 }
0x2126   :  { %v3684_v25 = vsel %vm90_vm0, %v3678_v24, 0.0 }
0x2127   :  { %3685 = vadd.xlane.f32.xlu0 %v3684_v25 }
0x21b0   :  { %v3683_v27 = vpop.xlane.xlu1 %3682 }
0x21b1   :  { %v3687_v28 = vmul.f32 0.03125, %v3683_v27 }
0x21b3   :  { %v3689_v45 = vsub.f32 %v3671_v6, %v3687_v28 }
0x21b4   :  { %v3686_v31 = vpop.xlane.xlu0 %3685 }
0x21b5   :  { %v3691_v9 = vmul.f32 %v3689_v45, %v3689_v45  ;;  %v3688_v32 = vmul.f32 0.03125, %v3686_v31 }
0x21b7   :  { %v3690_v36 = vsub.f32 %v3672_v38, %v3688_v32  ;;  %3695 = vrot.lane.b32.xlu0 %v3691_v9, %s5275_s30 }
0x21b9   :  { %v3692_v41 = vmul.f32 %v3690_v36, %v3690_v36 }
0x21bb   :  { %3697 = vrot.lane.b32.xlu1 %v3692_v41, %s5275_s30 }
0x2229   :  { %v3696_v30 = vpop.permute.xlu0 %3695 }
0x222a   :  { %v3701_v33 = vsel %vm90_vm0, %v3696_v30, 0.0 }
0x222b   :  { %3702 = vadd.xlane.f32.xlu1 %v3701_v33 }
0x222d   :  { %v3698_v34 = vpop.permute.xlu1 %3697 }
0x222e   :  { %v3704_v12 = vsel %vm90_vm0, %v3698_v34, 0.0 }
0x222f   :  { %3705 = vadd.xlane.f32.xlu0 %v3704_v12 }
0x223c   :  { %5112 = vrot.lane.b32.xlu1 %v5111_v10, %s5275_s30 }
0x2240   :  { %5117 = vrot.lane.b32.xlu1 %v5116_v20, %s5275_s30  ;;  %v2685_v20 = vld [vmem:[#allocation2 + $0x158] sm:$0xff] }
0x2241   :  { %v4932_v48 = vpack.c.bf16 %v2685_v20, %v2684_v26  ;;  %v5284_v26 = vmov 0.0|0.0  }
0x2243   :  { %4933 = vmatprep.subr.bf16.mxu1 %v4932_v48 }
0x2244   :  { %4935 = vmatpush3.bf16.msra.mxu1 %v4932_v48 }
0x2245   :  { %3718 = vrot.lane.b32.xlu0 %v5853_v11, %s5276_s8  ;;  %4937 = vmatprep.subr.bf16.mxu1 %v4936_v50 }
0x2248   :  { %4939 = vmatpush3.bf16.msra.mxu1 %v4936_v50 }
0x2249   :  { %4941 = vmatprep.subr.bf16.mxu1 %v4940_v56 }
0x224c   :  { %4943 = vmatpush3.bf16.msra.mxu1 %v4940_v56 }
0x224d   :  { %4945 = vmatprep.subr.bf16.mxu1 %v4944_v1 }
0x2250   :  { %4947 = vmatpush3.bf16.msra.mxu1 %v4944_v1 }
0x22b8   :  { %v3703_v39 = vpop.xlane.xlu1 %3702 }
0x22b9   :  { %v3707_v40 = vmul.f32 0.03125, %v3703_v39 }
0x22bb   :  { %v3709_v42 = vadd.f32 1e-05, %v3707_v40 }
0x22bc   :  { %v3706_v3 = vpop.xlane.xlu0 %3705  ;;  %v5113_v15 = vpop.permute.xlu1 %5112 }
0x22bd   :  { %5238 = vrsqrt.f32 %v3709_v42  ;;  %v3708_v43 = vmul.f32 0.03125, %v3706_v3  ;;  %v5115_v44 = vunpack.i.h.bf16 %v5113_v15  ;;  %v5114_v4 = vunpack.i.l.bf16 %v5113_v15  ;;  %v4191_v15 = vld [vmem:[#allocation2 + $0x192] ss:$0 sm:$0xff] }
0x22bf   :  { %v3710_v51 = vadd.f32 1e-05, %v3708_v43  ;;  %v4924_v35 = vpack.c.bf16 %v5115_v44, %v5114_v4  ;;  %v30_v43 = vld [vmem:[%s5919_s1] sm:$0x3] }
0x22c0   :  { %v5118_v5 = vpop.permute.xlu1 %5117  ;;  %v3719_v55 = vpop.permute.xlu0 %3718 }
0x22c1   :  { %5240 = vrsqrt.f32 %v3710_v51  ;;  %v5120_v10 = vunpack.i.h.bf16 %v5118_v5  ;;  %v5119_v47 = vunpack.i.l.bf16 %v5118_v5  ;;  %4925 = vmatprep.subr.bf16.mxu0 %v4924_v35 }
0x22c2   :  { %4927 = vmatpush3.bf16.msra.mxu0 %v4924_v35 }
0x22c3   :  { %v4928_v8 = vpack.c.bf16 %v5120_v10, %v5119_v47 }
0x22c5   :  { %4929 = vmatprep.subr.bf16.mxu0 %v4928_v8 }
0x22c6   :  { %4931 = vmatpush3.bf16.msra.mxu0 %v4928_v8 }
0x22c7   :  { %v5239_v49 = vpop.eup %5238  ;;  %4948 = vmatprep.subr.bf16.mxu0 %v5284_v26 }
0x22c8   :  { %v3713_v62 = vmul.f32 %v5239_v49, %v3689_v45  ;;  %v5286_v49 = vmov 0.0  }
0x22ca   :  { %v3715_v59 = vmul.f32 %v5853_v11, %v3713_v62 }
0x22cb   :  { %v5241_v52 = vpop.eup %5240 }
0x22cc   :  { %v3714_v0 = vmul.f32 %v5241_v52, %v3690_v36  ;;  %v3721_v60 = vadd.f32 %v3719_v55, %v3715_v59  ;;  %v4193_v59 = vld [vmem:[%s5919_s1 + $0x1] ss:$0 sm:$0xff] }
0x22ce   :  { %v3716_v57 = vmul.f32 %v5853_v11, %v3714_v0  ;;  %3725 = vrot.lane.b32.xlu0 %v3721_v60, %s5275_s30 }
0x22d0   :  { %v3722_v16 = vadd.f32 %v3719_v55, %v3716_v57 }
0x22d2   :  { %3727 = vrot.lane.b32.xlu1 %v3722_v16, %s5275_s30  ;;  %3746 = vrot.lane.b32.xlu0 %v5747_v46, %s5275_s30 }
0x2340   :  { %v3726_v63 = vpop.permute.xlu0 %3725 }
0x2341   :  { %4679 = vmatprep.mubr.msk.f32.mxu0 %vm90_vm0, %v3726_v63 }
0x2344   :  { %v3728_v58 = vpop.permute.xlu1 %3727  ;;  %v3747_v7 = vpop.permute.xlu0 %3746 }
0x2345   :  { %4680 = vmatmul.mubr.msk.f32.vlgmr.msra.gmra.mrb[24].mxu0 %vm90_vm0, %v3728_v58 }
0x2346   :  { %4705 = vmatprep.mubr.msk.f32.mxu0 %vm5285_vm5, %v5286_v49 }
0x2418   :  { %v4681_v11 = vpop.f32.mrb[24].mxu0 }
0x2419   :  { %v3825_v14 = vadd.f32 %v4681_v11, %v3747_v7  ;;  %v3819_v17 = vpop.f32.mrb[25].mxu0 }
0x241a   :  { %v3820_v19 = vadd.f32 %v3819_v17, %v3747_v7  ;;  %v5246_v7 = vld [vmem:[%s5919_s1] ss:$0 sm:$0xff] }
0x241b   :  { %v3829_v18 = vmax.f32 %v3825_v14, 0.0 }
0x241c   :  { %v3828_v22 = vmax.f32 %v3820_v19, 0.0 }
0x241e   :  { %4698 = vmatprep.mubr.msk.f32.mxu1 %vm1225_vm4, %v3828_v22 }
0x241f   :  { %4699 = vmatmul.mubr.msk.f32.vlgmr.msra.gmra.mrb[26].mxu1 %vm1225_vm4, %v3829_v18 }
0x24f2   :  { %v4700_v46 = vpop.f32.mrb[26].mxu1 }
0x24f3   :  { %v3908_v6 = vadd.f32 %v4700_v46, %v3719_v55  ;;  %v3902_v13 = vpop.f32.mrb[27].mxu1 }
0x24f4   :  { %v3903_v38 = vadd.f32 %v3902_v13, %v3719_v55 }
0x24f5   :  { %3915 = vrot.lane.b32.xlu0 %v3908_v6, %s5275_s30 }
0x24f6   :  { %3913 = vrot.lane.b32.xlu1 %v3903_v38, %s5275_s30 }
0x2567   :  { %v3916_v21 = vpop.permute.xlu0 %3915 }
0x2568   :  { %v3920_v23 = vadd.f32 %v3916_v21, %v3722_v16  ;;  %v3914_v24 = vpop.permute.xlu1 %3913 }
0x2569   :  { %v3919_v25 = vadd.f32 %v3914_v24, %v3721_v60 }
0x256a   :  { %3925 = vrot.lane.b32.xlu0 %v3920_v23, %s5275_s30 }
0x256b   :  { %3923 = vrot.lane.b32.xlu1 %v3919_v25, %s5275_s30 }
0x25dc   :  { %v3926_v27 = vpop.permute.xlu0 %3925 }
0x25dd   :  { %v3932_v28 = vsel %vm90_vm0, %v3926_v27, 0.0  ;;  %v3924_v45 = vpop.permute.xlu1 %3923 }
0x25de   :  { %v3929_v31 = vsel %vm90_vm0, %v3924_v45, 0.0  ;;  %3933 = vadd.xlane.f32.xlu0 %v3932_v28 }
0x25df   :  { %3930 = vadd.xlane.f32.xlu1 %v3929_v31 }
0x266b   :  { %v3934_v9 = vpop.xlane.xlu0 %3933 }
0x266c   :  { %v3936_v32 = vmul.f32 0.03125, %v3934_v9  ;;  %v3931_v36 = vpop.xlane.xlu1 %3930 }
0x266d   :  { %v3935_v41 = vmul.f32 0.03125, %v3931_v36 }
0x266e   :  { %v3938_v30 = vsub.f32 %v3920_v23, %v3936_v32 }
0x266f   :  { %v3937_v33 = vsub.f32 %v3919_v25, %v3935_v41 }
0x2670   :  { %v3940_v34 = vmul.f32 %v3938_v30, %v3938_v30 }
0x2671   :  { %v3939_v12 = vmul.f32 %v3937_v33, %v3937_v33 }
0x2672   :  { %3945 = vrot.lane.b32.xlu1 %v3940_v34, %s5275_s30 }
0x2673   :  { %3943 = vrot.lane.b32.xlu0 %v3939_v12, %s5275_s30 }
0x26e4   :  { %v3946_v39 = vpop.permute.xlu1 %3945 }
0x26e5   :  { %v3952_v40 = vsel %vm90_vm0, %v3946_v39, 0.0  ;;  %v3944_v42 = vpop.permute.xlu0 %3943 }
0x26e6   :  { %v3949_v3 = vsel %vm90_vm0, %v3944_v42, 0.0  ;;  %3953 = vadd.xlane.f32.xlu0 %v3952_v40 }
0x26e7   :  { %3950 = vadd.xlane.f32.xlu1 %v3949_v3 }
0x26f8   :  { %3973 = vrot.lane.b32.xlu1 %v4191_v15, %s5283_s15 }
0x26fc   :  { %3968 = vrot.lane.b32.xlu0 %v4191_v15, %s5275_s30 }
0x2700   :  { %3979 = vrot.lane.b32.xlu0 %v30_v43, %s5280_s12 }
0x2773   :  { %v3954_v44 = vpop.xlane.xlu0 %3953 }
0x2774   :  { %v3956_v4 = vmul.f32 0.03125, %v3954_v44  ;;  %v3951_v51 = vpop.xlane.xlu1 %3950 }
0x2775   :  { %v3955_v35 = vmul.f32 0.03125, %v3951_v51 }
0x2776   :  { %v3958_v5 = vadd.f32 1e-05, %v3956_v4 }
0x2777   :  { %v3957_v10 = vadd.f32 1e-05, %v3955_v35  ;;  %v3969_v8 = vpop.permute.xlu0 %3968 }
0x2778   :  { %5242 = vrsqrt.f32 %v3958_v5  ;;  %v3974_v29 = vpop.permute.xlu1 %3973 }
0x2779   :  { %5244 = vrsqrt.f32 %v3957_v10 }
0x277b   :  { %v3980_v57 = vpop.permute.xlu0 %3979 }
0x2782   :  { %v5243_v47 = vpop.eup %5242 }
0x2783   :  { %v5245_v20 = vpop.eup %5244  ;;  %v3962_v37 = vmul.f32 %v5243_v47, %v3938_v30 }
0x2784   :  { %v3961_v48 = vmul.f32 %v5245_v20, %v3937_v33 }
0x2785   :  { %v3972_v50 = vmul.f32 %v3969_v8, %v3962_v37 }
0x2786   :  { %v3971_v53 = vmul.f32 %v3969_v8, %v3961_v48 }
0x2787   :  { %v3977_v54 = vadd.f32 %v3974_v29, %v3972_v50 }
0x2788   :  { %v3976_v62 = vadd.f32 %v3974_v29, %v3971_v53 }
0x278a   :  { %v5121_v55 = vpack.i.bf16 %v3977_v54, %v3976_v62 }
0x278c   :  { %5122 = vrot.lane.b32.xlu1 %v5121_v55, %s5275_s30 }
0x2790   :  { %4066 = vrot.lane.b32.xlu1 %v4193_v59, %s5275_s30 }
0x27fe   :  { %v5123_v56 = vpop.permute.xlu1 %5122 }
0x27ff   :  { %v5125_v52 = vunpack.i.h.bf16 %v5123_v56  ;;  %v5124_v0 = vunpack.i.l.bf16 %v5123_v56 }
0x2801   :  { %v4949_v60 = vpack.c.bf16 %v5125_v52, %v5124_v0 }
0x2802   :  { %v4067_v16 = vpop.permute.xlu1 %4066 }
0x2803   :  { %4950 = vmatpush3.bf16.msra.mxu0 %v4949_v60 }
0x2806   :  { %4706 = vmatmul.mubr.msk.f32.vlgmr.msra.gmra.mrb[26].mxu0 %vm341_vm3, %v3980_v57 }
0x28d9   :  { %v4057_v63 = vpop.f32.mrb[26].mxu0 }
0x28da   :  { %v4069_v58 = vmul.f32 %v4067_v16, %v4057_v63  ;;  %v4707_v61 = vpop.f32.mrb[27].mxu0 }
0x28dc   :  { %v4071_v2 = vsel %vm4070_vm6, %v4069_v58, 0.0 }
0x28dd   :  { %4072 = vadd.xlane.f32.xlu0 %v4071_v2 }
0x296a   :  { %v4073_v1 = vpop.xlane.xlu0 %4072 }
0x296b   :  { %v4074_v11 = vadd.f32 %v5246_v7, %v4073_v1 }
0x296d   :  { %4076 = vrot.lane.b32.xlu1 %v4074_v11, %s5283_s15 }
0x29df   :  { %v4077_v14 = vpop.permute.xlu1 %4076 }
0x29e0   :  { %4080 = vst.msk [vmem:[%s5921_s3] sm:$0x3] %vm4079_vm7, %v4077_v14 }
0x29e1   :  { %4085 = vsyncpa [#allocation3], 1 }

</bundles_post_ra>
